<compile_context>
chip_gen: v7x
topology: tpu7x:2x2x1
jax: 0.10.0
libtpu: 0.0.40
codegen_flags: <defaults>
</compile_context>

<pallas_src>
import functools

import jax
import jax.numpy as jnp
from jax import lax
from jax.experimental import pallas as pl
from jax.experimental.pallas import tpu as pltpu

PAD = 0  # Vocab.PAD


# ----------------------------------------------------------------------------
# small helpers
# ----------------------------------------------------------------------------
def _vmem_specs(n):
    return [pl.BlockSpec(memory_space=pltpu.MemorySpace.VMEM) for _ in range(n)]


def _vmem_limit_bytes(*shaped):
    """Rough per-call VMEM budget: 2x (inputs+outputs) + headroom, capped for v7x."""
    total = 0
    for s in shaped:
        shape = s.shape if hasattr(s, "shape") else s
        n = 1
        for d in shape:
            n *= int(d)
        total += 4 * n  # f32
    return int(min(2 * total + (8 << 20), 64 << 20))


# ----------------------------------------------------------------------------
# Kernel 1: row-tiled (bias + optional tanh) matmul.  Used for:
#   - hoisted input->hidden gate precompute (encoder fwd+bwd fused, decoder GRU1)
#   - attention key cache projection
#   - fused readout  tanh([emb|out|attn] @ [Wi;Wh;Wc] + (bi+bh+bc))
# ----------------------------------------------------------------------------
def _matmul_bias_kernel(x_ref, w_ref, b_ref, o_ref, *, apply_tanh):
    acc = jnp.dot(x_ref[...], w_ref[...], preferred_element_type=jnp.float32) + b_ref[...]
    o_ref[...] = jnp.tanh(acc) if apply_tanh else acc


def linear_tiled(x, w, b=None, *, apply_tanh=False, block_rows=256):
    M, K = x.shape
    N = w.shape[1]
    if b is None:
        b = jnp.zeros((1, N), jnp.float32)
    # Largest row tile that keeps (8,128)-friendly blocks; fall back to full M.
    bm = block_rows if (M % block_rows == 0) else M
    grid = (M // bm,)
    kern = functools.partial(_matmul_bias_kernel, apply_tanh=apply_tanh)
    return pl.pallas_call(
        kern,
        out_shape=jax.ShapeDtypeStruct((M, N), jnp.float32),
        grid=grid,
        in_specs=[pl.BlockSpec((bm, K), lambda i: (i, 0)),
                  pl.BlockSpec((K, N), lambda i: (0, 0)),
                  pl.BlockSpec((1, N), lambda i: (0, 0))],
        out_specs=pl.BlockSpec((bm, N), lambda i: (i, 0)),
        compiler_params=pltpu.CompilerParams(
            dimension_semantics=("parallel",),
            vmem_limit_bytes=_vmem_limit_bytes((bm, K), (K, N), (1, N), (bm, N))),
    )(x, w, b)


# ----------------------------------------------------------------------------
# Kernel 2: fused bidirectional GRU recurrence (packed-sequence semantics:
# hidden not updated at PAD steps, output zeroed at PAD steps).
# Input->hidden gates are precomputed outside (gi_f/gi_b), so only the h @ W_hh
# matmuls remain inside the serial loop.  The backward direction is indexed
# in-kernel as S-1-t (no reversed copy in HBM).
#   gi_f/gi_b: [S, B, 3H], mask: [S, B, 1] (1.0 == PAD), W_hh: [H, 3H], b: [1, 3H]
#   outputs:   out_f/out_b: [S, B, H]
# ----------------------------------------------------------------------------
def _bigru_rec_kernel(gi_f_ref, gi_b_ref, mask_ref,
                      wf_hh_ref, bf_hh_ref, wb_hh_ref, bb_hh_ref,
                      out_f_ref, out_b_ref):
    S, B, _ = gi_f_ref.shape
    H = wf_hh_ref.shape[0]

    # loop-invariant loads hoisted out of the recurrence
    wf = wf_hh_ref[...]
    bf = bf_hh_ref[...]
    wb = wb_hh_ref[...]
    bb = bb_hh_ref[...]

    def gru_step(gi, h, whh, bhh):
        gh = jnp.dot(h, whh, preferred_element_type=jnp.float32) + bhh
        r = jax.nn.sigmoid(gi[:, 0:H] + gh[:, 0:H])
        z = jax.nn.sigmoid(gi[:, H:2 * H] + gh[:, H:2 * H])
        n = jnp.tanh(gi[:, 2 * H:3 * H] + r * gh[:, 2 * H:3 * H])
        return (1.0 - z) * n + z * h

    def step(t, carry):
        hf, hb = carry
        tb = S - 1 - t
        mf = mask_ref[t]                     # [B, 1]
        mb = mask_ref[tb]
        hf_new = gru_step(gi_f_ref[t], hf, wf, bf)
        hb_new = gru_step(gi_b_ref[tb], hb, wb, bb)
        hf_next = jnp.where(mf > 0.5, hf, hf_new)   # keep hidden at PAD
        hb_next = jnp.where(mb > 0.5, hb, hb_new)
        out_f_ref[t] = jnp.where(mf > 0.5, 0.0, hf_next)   # zero output at PAD
        out_b_ref[tb] = jnp.where(mb > 0.5, 0.0, hb_next)
        return (hf_next, hb_next)

    h0 = jnp.zeros((B, H), jnp.float32)
    lax.fori_loop(0, S, step, (h0, h0))


# ----------------------------------------------------------------------------
# Kernel 3: mlp bridge: masked mean over source positions -> tanh(Linear)
# ctx: [B, S, 2H], mask: [B, S] (1.0 == PAD), wb: [2H, H], bb: [1, H]
# ----------------------------------------------------------------------------
def _bridge_kernel(ctx_ref, mask_ref, wb_ref, bb_ref, out_ref):
    no_pad = 1.0 - mask_ref[...]                                   # [B, S]
    summed = jnp.sum(ctx_ref[...] * no_pad[:, :, None], axis=1)    # [B, 2H]
    denom = jnp.maximum(jnp.sum(no_pad, axis=1, keepdims=True), 1.0)
    mean = summed / denom
    out_ref[...] = jnp.tanh(
        jnp.dot(mean, wb_ref[...], preferred_element_type=jnp.float32) + bb_ref[...])


# ----------------------------------------------------------------------------
# Kernel 4: conditional-GRU decoder recurrence over all target steps.
#   per step: h1 = GRU1(emb_t, h)  (input gates precomputed in gi1);
#             Bahdanau attention(h1, ctx) on the MXU; h2 = GRU2(attn, h1).
# gi1: [T,B,3H], ctx: [B,S,2H], cache: [B,S,H], mask: [B,1,S], h0: [B,H]
# outputs: out [T,B,H], attn [T,B,2H]   (attention weights are not emitted --
# force_teaching discards them for copy_attn=False)
# ----------------------------------------------------------------------------
def _cgru_rec_kernel(gi1_ref, ctx_ref, cache_ref, mask_ref, h0_ref,
                     w1_hh_ref, b1_hh_ref,
                     wq_ref, bq_ref, v_ref,
                     w2_ih_ref, w2_hh_ref, b2_ih_ref, b2_hh_ref,
                     out_ref, attn_ref):
    T, B, _ = gi1_ref.shape
    H = w1_hh_ref.shape[0]

    # loop-invariant loads / broadcasts hoisted out of the recurrence
    ctx = ctx_ref[...]                                        # [B, S, 2H]
    cache = cache_ref[...]                                    # [B, S, H]
    mask3 = mask_ref[...]                                     # [B, 1, S]
    w1_hh = w1_hh_ref[...]
    b1_hh = b1_hh_ref[...]
    wq = wq_ref[...]
    bq = bq_ref[...]
    v_b = jnp.broadcast_to(v_ref[...].reshape(1, 1, H), (B, 1, H))   # [B, 1, H]
    w2_ih = w2_ih_ref[...]
    w2_hh = w2_hh_ref[...]
    b2_ih = b2_ih_ref[...]
    b2_hh = b2_hh_ref[...]

    def gru_gates(gi, h, whh, bhh):
        gh = jnp.dot(h, whh, preferred_element_type=jnp.float32) + bhh
        r = jax.nn.sigmoid(gi[:, 0:H] + gh[:, 0:H])
        z = jax.nn.sigmoid(gi[:, H:2 * H] + gh[:, H:2 * H])
        n = jnp.tanh(gi[:, 2 * H:3 * H] + r * gh[:, 2 * H:3 * H])
        return (1.0 - z) * n + z * h

    def step(t, h):
        # GRU1 (input gates hoisted into gi1)
        h1 = gru_gates(gi1_ref[t], h, w1_hh, b1_hh)                           # [B, H]
        # Bahdanau attention
        q = jnp.dot(h1, wq, preferred_element_type=jnp.float32) + bq          # [B, H]
        e = jnp.tanh(cache + q[:, None, :])                                   # [B, S, H]
        logits = jnp.einsum('bkh,bsh->bks', v_b, e,
                            preferred_element_type=jnp.float32)               # [B, 1, S]
        logits = jnp.where(mask3 > 0.5, -1e18, logits)
        m = jnp.max(logits, axis=-1, keepdims=True)                           # [B, 1, 1]
        p = jnp.exp(logits - m)
        l = jnp.sum(p, axis=-1, keepdims=True)                                # [B, 1, 1]
        w = p / l                                                             # softmax (exp/recip on EUP)
        a = jnp.einsum('bks,bsc->bkc', w, ctx,
                       preferred_element_type=jnp.float32)[:, 0, :]           # [B, 2H]
        # GRU2 (input depends on attention -> stays in the loop)
        gi2 = jnp.dot(a, w2_ih, preferred_element_type=jnp.float32) + b2_ih
        h2 = gru_gates(gi2, h1, w2_hh, b2_hh)
        out_ref[t] = h2
        attn_ref[t] = a
        return h2

    lax.fori_loop(0, T, step, h0_ref[...])


# ----------------------------------------------------------------------------
# Parameter init (deterministic, synthetic).
# ----------------------------------------------------------------------------
def init_params(key, n_src_vocab, n_tgt_vocab, d_word_vec, d_model):
    E, H = d_word_vec, d_model

    def nrm(k, shape, scale=0.05):
        return (scale * jax.random.normal(k, shape)).astype(jnp.float32)

    keys = jax.random.split(key, 24)
    p = {}
    # embeddings (PAD row zeroed, like nn.Embedding(padding_idx=PAD))
    p['enc_emb'] = nrm(keys[0], (n_src_vocab, E)).at[PAD].set(0.0)
    p['dec_emb'] = nrm(keys[1], (n_tgt_vocab, E)).at[PAD].set(0.0)
    # encoder bi-GRU (gate order r, z, n)
    for i, d in enumerate(('f', 'b')):
        p[f'enc_w_ih_{d}'] = nrm(keys[2 + 4 * i], (E, 3 * H))
        p[f'enc_w_hh_{d}'] = nrm(keys[3 + 4 * i], (H, 3 * H))
        p[f'enc_b_ih_{d}'] = jnp.zeros((1, 3 * H), jnp.float32)
        p[f'enc_b_hh_{d}'] = jnp.zeros((1, 3 * H), jnp.float32)
    # bridge
    p['w_bridge'] = nrm(keys[10], (2 * H, H))
    p['b_bridge'] = jnp.zeros((1, H), jnp.float32)
    # attention (Bahdanau): key / query / logit
    p['w_key'] = nrm(keys[11], (2 * H, H))
    p['w_query'] = nrm(keys[12], (H, H))
    p['b_query'] = jnp.zeros((1, H), jnp.float32)
    p['v_logit'] = nrm(keys[13], (1, H))
    # CGRU cell
    p['w1_ih'] = nrm(keys[14], (E, 3 * H))
    p['w1_hh'] = nrm(keys[15], (H, 3 * H))
    p['b1_ih'] = jnp.zeros((1, 3 * H), jnp.float32)
    p['b1_hh'] = jnp.zeros((1, 3 * H), jnp.float32)
    p['w2_ih'] = nrm(keys[16], (2 * H, 3 * H))
    p['w2_hh'] = nrm(keys[17], (H, 3 * H))
    p['b2_ih'] = jnp.zeros((1, 3 * H), jnp.float32)
    p['b2_hh'] = jnp.zeros((1, 3 * H), jnp.float32)
    # decoder readout linears
    p['w_lin_input'] = nrm(keys[18], (E, E))
    p['b_lin_input'] = jnp.zeros((1, E), jnp.float32)
    p['w_lin_hidden'] = nrm(keys[19], (H, E))
    p['b_lin_hidden'] = jnp.zeros((1, E), jnp.float32)
    p['w_lin_ctx'] = nrm(keys[20], (2 * H, E))
    p['b_lin_ctx'] = jnp.zeros((1, E), jnp.float32)
    # Generator proj weight exists in the module but force_teaching (train mode)
    # never applies it; shared with dec_emb when proj_share_weight=True.
    return p


# ----------------------------------------------------------------------------
# DL4MT.forward(src, tgt, mode='train')  ==  force_teaching(src, tgt.T)
# ----------------------------------------------------------------------------
def dl4mt_forward(params, src_seq, tgt_seq):
    B, S = src_seq.shape
    T = tgt_seq.shape[1]
    # static sizes derived from weight shapes (NOT from python ints in the pytree)
    E = params['w_lin_input'].shape[0]
    H = params['w_bridge'].shape[1]

    # -------- Encoder --------
    x_mask = (src_seq == PAD).astype(jnp.float32)                 # [B, S]
    src_emb = jnp.take(params['enc_emb'], src_seq, axis=0)        # [B, S, E]
    emb_tm = jnp.transpose(src_emb, (1, 0, 2))                    # [S, B, E]
    mask_tm = jnp.transpose(x_mask, (1, 0))[:, :, None]           # [S, B, 1]

    # Hoisted input->hidden matmul, both directions fused in one MXU matmul.
    w_ih_both = jnp.concatenate([params['enc_w_ih_f'], params['enc_w_ih_b']], axis=1)  # [E, 6H]
    b_ih_both = jnp.concatenate([params['enc_b_ih_f'], params['enc_b_ih_b']], axis=1)  # [1, 6H]
    gi_all = linear_tiled(emb_tm.reshape(S * B, E), w_ih_both, b_ih_both)
    gi_all = gi_all.reshape(S, B, 6 * H)
    gi_f = gi_all[:, :, :3 * H]
    gi_b = gi_all[:, :, 3 * H:]

    ctx_f, ctx_b = pl.pallas_call(
        _bigru_rec_kernel,
        out_shape=(jax.ShapeDtypeStruct((S, B, H), jnp.float32),
                   jax.ShapeDtypeStruct((S, B, H), jnp.float32)),
        in_specs=_vmem_specs(7),
        out_specs=(pl.BlockSpec(memory_space=pltpu.MemorySpace.VMEM),
                   pl.BlockSpec(memory_space=pltpu.MemorySpace.VMEM)),
        compiler_params=pltpu.CompilerParams(
            vmem_limit_bytes=_vmem_limit_bytes(gi_f, gi_b, mask_tm,
                                               (S, B, H), (S, B, H),
                                               (H, 3 * H), (H, 3 * H))),
    )(gi_f, gi_b, mask_tm,
      params['enc_w_hh_f'], params['enc_b_hh_f'],
      params['enc_w_hh_b'], params['enc_b_hh_b'])

    ctx = jnp.transpose(jnp.concatenate([ctx_f, ctx_b], axis=-1), (1, 0, 2))  # [B, S, 2H]

    # -------- Decoder init (mlp bridge) --------
    dec_init = pl.pallas_call(
        _bridge_kernel,
        out_shape=jax.ShapeDtypeStruct((B, H), jnp.float32),
        in_specs=_vmem_specs(4),
        out_specs=pl.BlockSpec(memory_space=pltpu.MemorySpace.VMEM),
        compiler_params=pltpu.CompilerParams(
            vmem_limit_bytes=_vmem_limit_bytes(ctx, x_mask, (2 * H, H), (B, H))),
    )(ctx, x_mask, params['w_bridge'], params['b_bridge'])

    # -------- attention key cache (cgru_cell.compute_cache) --------
    cache = linear_tiled(ctx.reshape(B * S, 2 * H), params['w_key']).reshape(B, S, H)

    # -------- Decoder CGRU recurrence --------
    y_tm = jnp.transpose(tgt_seq, (1, 0))                         # [T, B]
    tgt_emb = jnp.take(params['dec_emb'], y_tm, axis=0)           # [T, B, E]
    emb_flat = tgt_emb.reshape(T * B, E)

    # Hoisted GRU1 input->hidden gates (one big matmul instead of T small ones).
    gi1_all = linear_tiled(emb_flat, params['w1_ih'], params['b1_ih']).reshape(T, B, 3 * H)

    mask_q = x_mask[:, None, :]                                   # [B, 1, S]

    out, attn = pl.pallas_call(
        _cgru_rec_kernel,
        out_shape=(jax.ShapeDtypeStruct((T, B, H), jnp.float32),
                   jax.ShapeDtypeStruct((T, B, 2 * H), jnp.float32)),
        in_specs=_vmem_specs(14),
        out_specs=(pl.BlockSpec(memory_space=pltpu.MemorySpace.VMEM),
                   pl.BlockSpec(memory_space=pltpu.MemorySpace.VMEM)),
        compiler_params=pltpu.CompilerParams(
            vmem_limit_bytes=_vmem_limit_bytes(gi1_all, ctx, cache, mask_q, dec_init,
                                               (T, B, H), (T, B, 2 * H),
                                               (H, 3 * H), (2 * H, 3 * H), (H, 3 * H))),
    )(gi1_all, ctx, cache, mask_q, dec_init,
      params['w1_hh'], params['b1_hh'],
      params['w_query'], params['b_query'], params['v_logit'],
      params['w2_ih'], params['w2_hh'], params['b2_ih'], params['b2_hh'])

    # -------- fused readout: tanh([emb|out|attn] @ [Wi;Wh;Wc] + (bi+bh+bc)) --------
    x_cat = jnp.concatenate(
        [emb_flat, out.reshape(T * B, H), attn.reshape(T * B, 2 * H)], axis=1)   # [T*B, E+3H]
    w_out = jnp.concatenate(
        [params['w_lin_input'], params['w_lin_hidden'], params['w_lin_ctx']], axis=0)
    b_out = params['b_lin_input'] + params['b_lin_hidden'] + params['b_lin_ctx']
    logits_flat = linear_tiled(x_cat, w_out, b_out, apply_tanh=True)              # [T*B, E]

    logits = logits_flat.reshape(T, B, E)
    # dropout rate is 0.0 -> identity.
    # force_teaching returns logits.transpose(1, 0), None, None (copy_attn=False).
    return jnp.transpose(logits, (1, 0, 2)), None, None
    # TODO(synk): mode='infer' (batch_beam_search) with its top-k / gather beam loop is
    # host-side search control flow and is not implemented as a kernel.


if __name__ == "__main__":
    B, S, T = 2, 8, 8
    E, H = 32, 32
    n_src_vocab, n_tgt_vocab = 50, 50

    key = jax.random.PRNGKey(0)
    k_par, k_src, k_tgt = jax.random.split(key, 3)

    params = init_params(k_par, n_src_vocab, n_tgt_vocab, E, H)

    src_seq = jax.random.randint(k_src, (B, S), 3, n_src_vocab, dtype=jnp.int32)
    src_seq = src_seq.at[1, -2:].set(PAD)   # exercise PAD masking on one row
    tgt_seq = jax.random.randint(k_tgt, (B, T), 3, n_tgt_vocab, dtype=jnp.int32)

    logits, attn_w, logits_copy = jax.jit(dl4mt_forward)(params, src_seq, tgt_seq)
    logits = jax.block_until_ready(logits)

    assert logits.shape == (B, T, E), logits.shape
    assert bool(jnp.all(jnp.isfinite(logits)))
    print("KERNEL_OK")
</pallas_src>

<mosaic_0001>
module attributes {stable_mosaic.version = 11 : i64} {
  func.func @_bridge_kernel(%arg0: memref<2x8x64xf32, #tpu.memory_space<vmem>>, %arg1: memref<2x8xf32, #tpu.memory_space<vmem>>, %arg2: memref<64x32xf32, #tpu.memory_space<vmem>>, %arg3: memref<1x32xf32, #tpu.memory_space<vmem>>, %arg4: memref<2x32xf32, #tpu.memory_space<vmem>>) attributes {dimension_semantics = [], scalar_prefetch = 0 : i64, scratch_operands = 0 : i64, tpu.core_type = #tpu.core_type<tc>} {
    %c0 = arith.constant 0 : index
    %c0_0 = arith.constant 0 : index
    %0 = vector.load %arg1[%c0, %c0_0] : memref<2x8xf32, #tpu.memory_space<vmem>>, vector<2x8xf32>
    %cst = arith.constant 1.000000e+00 : f32
    %1 = vector.broadcast %cst : f32 to vector<2x8xf32>
    %2 = arith.subf %1, %0 : vector<2x8xf32>
    %c0_1 = arith.constant 0 : index
    %c0_2 = arith.constant 0 : index
    %c0_3 = arith.constant 0 : index
    %3 = vector.load %arg0[%c0_1, %c0_2, %c0_3] : memref<2x8x64xf32, #tpu.memory_space<vmem>>, vector<2x8x64xf32>
    %4 = vector.shape_cast %2 : vector<2x8xf32> to vector<2x8x1xf32>
    %5 = vector.broadcast %4 : vector<2x8x1xf32> to vector<2x8x64xf32>
    %6 = arith.mulf %3, %5 : vector<2x8x64xf32>
    %cst_4 = arith.constant dense<0.000000e+00> : vector<2x64xf32>
    %7 = vector.multi_reduction <add>, %6, %cst_4 [1] : vector<2x8x64xf32> to vector<2x64xf32>
    %cst_5 = arith.constant dense<0.000000e+00> : vector<2xf32>
    %8 = vector.multi_reduction <add>, %2, %cst_5 [1] : vector<2x8xf32> to vector<2xf32>
    %9 = vector.shape_cast %8 : vector<2xf32> to vector<2x1xf32>
    %cst_6 = arith.constant 1.000000e+00 : f32
    %10 = vector.broadcast %cst_6 : f32 to vector<2x1xf32>
    %11 = arith.maximumf %9, %10 : vector<2x1xf32>
    %12 = vector.broadcast %11 : vector<2x1xf32> to vector<2x64xf32>
    %13 = arith.divf %7, %12 : vector<2x64xf32>
    %c0_7 = arith.constant 0 : index
    %c0_8 = arith.constant 0 : index
    %14 = vector.load %arg2[%c0_7, %c0_8] : memref<64x32xf32, #tpu.memory_space<vmem>>, vector<64x32xf32>
    %cst_9 = arith.constant dense<0.000000e+00> : vector<2x32xf32>
    %15 = tpu.matmul %13, %14, %cst_9 {dimension_numbers = #tpu.dot_dimension_numbers<[1], [0], [0], [1], [0, 0, 1, 1], [], []>} : vector<2x64xf32>, vector<64x32xf32>, vector<2x32xf32> -> vector<2x32xf32>
    %c0_10 = arith.constant 0 : index
    %c0_11 = arith.constant 0 : index
    %16 = vector.load %arg3[%c0_10, %c0_11] : memref<1x32xf32, #tpu.memory_space<vmem>>, vector<1x32xf32>
    %17 = vector.broadcast %16 : vector<1x32xf32> to vector<2x32xf32>
    %18 = arith.addf %15, %17 : vector<2x32xf32>
    %19 = math.tanh %18 : vector<2x32xf32>
    %c0_12 = arith.constant 0 : index
    %c0_13 = arith.constant 0 : index
    %20 = vector.load %arg4[%c0_12, %c0_13] : memref<2x32xf32, #tpu.memory_space<vmem>>, vector<2x32xf32>
    tpu.vector_store %arg4[%c0_12, %c0_13], %19 {strides = array<i32>} : memref<2x32xf32, #tpu.memory_space<vmem>>, vector<2x32xf32>,
    return
  }
}

module attributes {stable_mosaic.version = 11 : i64} {
  func.func @_matmul_bias_kernel(%arg0: i32, %arg1: memref<16x32xf32, #tpu.memory_space<vmem>>, %arg2: memref<32x192xf32, #tpu.memory_space<vmem>>, %arg3: memref<1x192xf32, #tpu.memory_space<vmem>>, %arg4: memref<16x192xf32, #tpu.memory_space<vmem>>) attributes {dimension_semantics = [#tpu.dimension_semantics<parallel>], iteration_bounds = array<i64: 1>, scalar_prefetch = 0 : i64, scratch_operands = 0 : i64, tpu.core_type = #tpu.core_type<tc>, window_params = [{transform_indices = @transform_0, window_bounds = array<i64: 16, 32>}, {pipeline_mode = #tpu.pipeline_mode<synchronous>, transform_indices = @transform_1, window_bounds = array<i64: 32, 192>}, {pipeline_mode = #tpu.pipeline_mode<synchronous>, transform_indices = @transform_2, window_bounds = array<i64: 1, 192>}, {transform_indices = @transform_3, window_bounds = array<i64: 16, 192>}]} {
    %c0 = arith.constant 0 : index
    %c0_0 = arith.constant 0 : index
    %0 = vector.load %arg1[%c0, %c0_0] : memref<16x32xf32, #tpu.memory_space<vmem>>, vector<16x32xf32>
    %c0_1 = arith.constant 0 : index
    %c0_2 = arith.constant 0 : index
    %1 = vector.load %arg2[%c0_1, %c0_2] : memref<32x192xf32, #tpu.memory_space<vmem>>, vector<32x192xf32>
    %cst = arith.constant dense<0.000000e+00> : vector<16x192xf32>
    %2 = tpu.matmul %0, %1, %cst {dimension_numbers = #tpu.dot_dimension_numbers<[1], [0], [0], [1], [0, 0, 1, 1], [], []>} : vector<16x32xf32>, vector<32x192xf32>, vector<16x192xf32> -> vector<16x192xf32>
    %c0_3 = arith.constant 0 : index
    %c0_4 = arith.constant 0 : index
    %3 = vector.load %arg3[%c0_3, %c0_4] : memref<1x192xf32, #tpu.memory_space<vmem>>, vector<1x192xf32>
    %4 = vector.broadcast %3 : vector<1x192xf32> to vector<16x192xf32>
    %5 = arith.addf %2, %4 : vector<16x192xf32>
    %c0_5 = arith.constant 0 : index
    %c0_6 = arith.constant 0 : index
    %6 = vector.load %arg4[%c0_5, %c0_6] : memref<16x192xf32, #tpu.memory_space<vmem>>, vector<16x192xf32>
    tpu.vector_store %arg4[%c0_5, %c0_6], %5 {strides = array<i32>} : memref<16x192xf32, #tpu.memory_space<vmem>>, vector<16x192xf32>,
    return
  }
  func.func @transform_0(%arg0: i32) -> (i32, i32) {
    %c0_i32 = arith.constant 0 : i32
    %c0_i32_0 = arith.constant 0 : i32
    return %arg0, %c0_i32 : i32, i32
  }
  func.func @transform_1(%arg0: i32) -> (i32, i32) {
    %c0_i32 = arith.constant 0 : i32
    %c0_i32_0 = arith.constant 0 : i32
    %c0_i32_1 = arith.constant 0 : i32
    return %c0_i32, %c0_i32_0 : i32, i32
  }
  func.func @transform_2(%arg0: i32) -> (i32, i32) {
    %c0_i32 = arith.constant 0 : i32
    %c0_i32_0 = arith.constant 0 : i32
    %c0_i32_1 = arith.constant 0 : i32
    return %c0_i32, %c0_i32_0 : i32, i32
  }
  func.func @transform_3(%arg0: i32) -> (i32, i32) {
    %c0_i32 = arith.constant 0 : i32
    %c0_i32_0 = arith.constant 0 : i32
    return %arg0, %c0_i32 : i32, i32
  }
}

module attributes {stable_mosaic.version = 11 : i64} {
  func.func @_bigru_rec_kernel(%arg0: memref<8x2x96xf32, #tpu.memory_space<vmem>>, %arg1: memref<8x2x96xf32, #tpu.memory_space<vmem>>, %arg2: memref<8x2x1xf32, #tpu.memory_space<vmem>>, %arg3: memref<32x96xf32, #tpu.memory_space<vmem>>, %arg4: memref<1x96xf32, #tpu.memory_space<vmem>>, %arg5: memref<32x96xf32, #tpu.memory_space<vmem>>, %arg6: memref<1x96xf32, #tpu.memory_space<vmem>>, %arg7: memref<8x2x32xf32, #tpu.memory_space<vmem>>, %arg8: memref<8x2x32xf32, #tpu.memory_space<vmem>>) attributes {dimension_semantics = [], scalar_prefetch = 0 : i64, scratch_operands = 0 : i64, tpu.core_type = #tpu.core_type<tc>} {
    %c0 = arith.constant 0 : index
    %c0_0 = arith.constant 0 : index
    %0 = vector.load %arg3[%c0, %c0_0] : memref<32x96xf32, #tpu.memory_space<vmem>>, vector<32x96xf32>
    %c0_1 = arith.constant 0 : index
    %c0_2 = arith.constant 0 : index
    %1 = vector.load %arg4[%c0_1, %c0_2] : memref<1x96xf32, #tpu.memory_space<vmem>>, vector<1x96xf32>
    %c0_3 = arith.constant 0 : index
    %c0_4 = arith.constant 0 : index
    %2 = vector.load %arg5[%c0_3, %c0_4] : memref<32x96xf32, #tpu.memory_space<vmem>>, vector<32x96xf32>
    %c0_5 = arith.constant 0 : index
    %c0_6 = arith.constant 0 : index
    %3 = vector.load %arg6[%c0_5, %c0_6] : memref<1x96xf32, #tpu.memory_space<vmem>>, vector<1x96xf32>
    %cst = arith.constant 0.000000e+00 : f32
    %4 = vector.broadcast %cst : f32 to vector<2x32xf32>
    %c0_i32 = arith.constant 0 : i32
    %c8_i32 = arith.constant 8 : i32
    %5 = arith.addi %c0_i32, %c8_i32 : i32
    %c1_i32 = arith.constant 1 : i32
    %6:2 = scf.for %arg9 = %c0_i32 to %5 step %c1_i32 iter_args(%arg10 = %4, %arg11 = %4) -> (vector<2x32xf32>, vector<2x32xf32>)  : i32 {
      %c7_i32 = arith.constant 7 : i32
      %7 = arith.subi %c7_i32, %arg9 : i32
      %8 = arith.index_cast %arg9 : i32 to index
      %c0_8 = arith.constant 0 : index
      %c0_9 = arith.constant 0 : index
      %9 = vector.load %arg2[%8, %c0_8, %c0_9] : memref<8x2x1xf32, #tpu.memory_space<vmem>>, vector<1x2x1xf32>
      %10 = vector.shape_cast %9 : vector<1x2x1xf32> to vector<2x1xf32>
      %11 = arith.index_cast %7 : i32 to index
      %c0_10 = arith.constant 0 : index
      %c0_11 = arith.constant 0 : index
      %12 = vector.load %arg2[%11, %c0_10, %c0_11] : memref<8x2x1xf32, #tpu.memory_space<vmem>>, vector<1x2x1xf32>
      %13 = vector.shape_cast %12 : vector<1x2x1xf32> to vector<2x1xf32>
      %14 = arith.index_cast %arg9 : i32 to index
      %c0_12 = arith.constant 0 : index
      %c0_13 = arith.constant 0 : index
      %15 = vector.load %arg0[%14, %c0_12, %c0_13] : memref<8x2x96xf32, #tpu.memory_space<vmem>>, vector<1x2x96xf32>
      %16 = vector.shape_cast %15 : vector<1x2x96xf32> to vector<2x96xf32>
      %cst_14 = arith.constant dense<0.000000e+00> : vector<2x96xf32>
      %17 = tpu.matmul %arg10, %0, %cst_14 {dimension_numbers = #tpu.dot_dimension_numbers<[1], [0], [0], [1], [0, 0, 1, 1], [], []>} : vector<2x32xf32>, vector<32x96xf32>, vector<2x96xf32> -> vector<2x96xf32>
      %18 = vector.broadcast %1 : vector<1x96xf32> to vector<2x96xf32>
      %19 = arith.addf %17, %18 : vector<2x96xf32>
      %20 = vector.extract_strided_slice %16 {offsets = [0, 0], sizes = [2, 32], strides = [1, 1]} : vector<2x96xf32> to vector<2x32xf32>
      %21 = vector.extract_strided_slice %19 {offsets = [0, 0], sizes = [2, 32], strides = [1, 1]} : vector<2x96xf32> to vector<2x32xf32>
      %22 = arith.addf %20, %21 : vector<2x32xf32>
      %23 = arith.negf %22 : vector<2x32xf32>
      %24 = math.exp %23 : vector<2x32xf32>
      %cst_15 = arith.constant 1.000000e+00 : f32
      %25 = vector.broadcast %cst_15 : f32 to vector<2x32xf32>
      %26 = arith.addf %25, %24 : vector<2x32xf32>
      %27 = arith.divf %25, %26 : vector<2x32xf32>
      %28 = vector.extract_strided_slice %16 {offsets = [0, 32], sizes = [2, 32], strides = [1, 1]} : vector<2x96xf32> to vector<2x32xf32>
      %29 = vector.extract_strided_slice %19 {offsets = [0, 32], sizes = [2, 32], strides = [1, 1]} : vector<2x96xf32> to vector<2x32xf32>
      %30 = arith.addf %28, %29 : vector<2x32xf32>
      %31 = arith.negf %30 : vector<2x32xf32>
      %32 = math.exp %31 : vector<2x32xf32>
      %cst_16 = arith.constant 1.000000e+00 : f32
      %33 = vector.broadcast %cst_16 : f32 to vector<2x32xf32>
      %34 = arith.addf %33, %32 : vector<2x32xf32>
      %35 = arith.divf %33, %34 : vector<2x32xf32>
      %36 = vector.extract_strided_slice %16 {offsets = [0, 64], sizes = [2, 32], strides = [1, 1]} : vector<2x96xf32> to vector<2x32xf32>
      %37 = vector.extract_strided_slice %19 {offsets = [0, 64], sizes = [2, 32], strides = [1, 1]} : vector<2x96xf32> to vector<2x32xf32>
      %38 = arith.mulf %27, %37 : vector<2x32xf32>
      %39 = arith.addf %36, %38 : vector<2x32xf32>
      %40 = math.tanh %39 : vector<2x32xf32>
      %cst_17 = arith.constant 1.000000e+00 : f32
      %41 = vector.broadcast %cst_17 : f32 to vector<2x32xf32>
      %42 = arith.subf %41, %35 : vector<2x32xf32>
      %43 = arith.mulf %42, %40 : vector<2x32xf32>
      %44 = arith.mulf %35, %arg10 : vector<2x32xf32>
      %45 = arith.addf %43, %44 : vector<2x32xf32>
      %46 = arith.index_cast %7 : i32 to index
      %c0_18 = arith.constant 0 : index
      %c0_19 = arith.constant 0 : index
      %47 = vector.load %arg1[%46, %c0_18, %c0_19] : memref<8x2x96xf32, #tpu.memory_space<vmem>>, vector<1x2x96xf32>
      %48 = vector.shape_cast %47 : vector<1x2x96xf32> to vector<2x96xf32>
      %cst_20 = arith.constant dense<0.000000e+00> : vector<2x96xf32>
      %49 = tpu.matmul %arg11, %2, %cst_20 {dimension_numbers = #tpu.dot_dimension_numbers<[1], [0], [0], [1], [0, 0, 1, 1], [], []>} : vector<2x32xf32>, vector<32x96xf32>, vector<2x96xf32> -> vector<2x96xf32>
      %50 = vector.broadcast %3 : vector<1x96xf32> to vector<2x96xf32>
      %51 = arith.addf %49, %50 : vector<2x96xf32>
      %52 = vector.extract_strided_slice %48 {offsets = [0, 0], sizes = [2, 32], strides = [1, 1]} : vector<2x96xf32> to vector<2x32xf32>
      %53 = vector.extract_strided_slice %51 {offsets = [0, 0], sizes = [2, 32], strides = [1, 1]} : vector<2x96xf32> to vector<2x32xf32>
      %54 = arith.addf %52, %53 : vector<2x32xf32>
      %55 = arith.negf %54 : vector<2x32xf32>
      %56 = math.exp %55 : vector<2x32xf32>
      %cst_21 = arith.constant 1.000000e+00 : f32
      %57 = vector.broadcast %cst_21 : f32 to vector<2x32xf32>
      %58 = arith.addf %57, %56 : vector<2x32xf32>
      %59 = arith.divf %57, %58 : vector<2x32xf32>
      %60 = vector.extract_strided_slice %48 {offsets = [0, 32], sizes = [2, 32], strides = [1, 1]} : vector<2x96xf32> to vector<2x32xf32>
      %61 = vector.extract_strided_slice %51 {offsets = [0, 32], sizes = [2, 32], strides = [1, 1]} : vector<2x96xf32> to vector<2x32xf32>
      %62 = arith.addf %60, %61 : vector<2x32xf32>
      %63 = arith.negf %62 : vector<2x32xf32>
      %64 = math.exp %63 : vector<2x32xf32>
      %cst_22 = arith.constant 1.000000e+00 : f32
      %65 = vector.broadcast %cst_22 : f32 to vector<2x32xf32>
      %66 = arith.addf %65, %64 : vector<2x32xf32>
      %67 = arith.divf %65, %66 : vector<2x32xf32>
      %68 = vector.extract_strided_slice %48 {offsets = [0, 64], sizes = [2, 32], strides = [1, 1]} : vector<2x96xf32> to vector<2x32xf32>
      %69 = vector.extract_strided_slice %51 {offsets = [0, 64], sizes = [2, 32], strides = [1, 1]} : vector<2x96xf32> to vector<2x32xf32>
      %70 = arith.mulf %59, %69 : vector<2x32xf32>
      %71 = arith.addf %68, %70 : vector<2x32xf32>
      %72 = math.tanh %71 : vector<2x32xf32>
      %cst_23 = arith.constant 1.000000e+00 : f32
      %73 = vector.broadcast %cst_23 : f32 to vector<2x32xf32>
      %74 = arith.subf %73, %67 : vector<2x32xf32>
      %75 = arith.mulf %74, %72 : vector<2x32xf32>
      %76 = arith.mulf %67, %arg11 : vector<2x32xf32>
      %77 = arith.addf %75, %76 : vector<2x32xf32>
      %cst_24 = arith.constant 5.000000e-01 : f32
      %78 = vector.broadcast %cst_24 : f32 to vector<2x1xf32>
      %79 = arith.cmpf ogt, %10, %78 : vector<2x1xf32>
      %80 = vector.shape_cast %79 : vector<2x1xi1> to vector<2x1xi1>
      %81 = vector.broadcast %80 : vector<2x1xi1> to vector<2x32xi1>
      %82 = arith.select %81, %arg10, %45 : vector<2x32xi1>, vector<2x32xf32>
      %cst_25 = arith.constant 5.000000e-01 : f32
      %83 = vector.broadcast %cst_25 : f32 to vector<2x1xf32>
      %84 = arith.cmpf ogt, %13, %83 : vector<2x1xf32>
      %85 = vector.shape_cast %84 : vector<2x1xi1> to vector<2x1xi1>
      %86 = vector.broadcast %85 : vector<2x1xi1> to vector<2x32xi1>
      %87 = arith.select %86, %arg11, %77 : vector<2x32xi1>, vector<2x32xf32>
      %cst_26 = arith.constant 5.000000e-01 : f32
      %88 = vector.broadcast %cst_26 : f32 to vector<2x1xf32>
      %89 = arith.cmpf ogt, %10, %88 : vector<2x1xf32>
      %cst_27 = arith.constant 0.000000e+00 : f32
      %90 = vector.shape_cast %89 : vector<2x1xi1> to vector<2x1xi1>
      %91 = vector.broadcast %90 : vector<2x1xi1> to vector<2x32xi1>
      %92 = vector.broadcast %cst_27 : f32 to vector<2x32xf32>
      %93 = arith.select %91, %92, %82 : vector<2x32xi1>, vector<2x32xf32>
      %94 = arith.index_cast %arg9 : i32 to index
      %c0_28 = arith.constant 0 : index
      %c0_29 = arith.constant 0 : index
      %95 = vector.load %arg7[%94, %c0_28, %c0_29] : memref<8x2x32xf32, #tpu.memory_space<vmem>>, vector<1x2x32xf32>
      %96 = vector.shape_cast %95 : vector<1x2x32xf32> to vector<2x32xf32>
      %97 = vector.shape_cast %93 : vector<2x32xf32> to vector<1x2x32xf32>
      tpu.vector_store %arg7[%94, %c0_28, %c0_29], %97 {strides = array<i32>} : memref<8x2x32xf32, #tpu.memory_space<vmem>>, vector<1x2x32xf32>,
      %cst_30 = arith.constant 5.000000e-01 : f32
      %98 = vector.broadcast %cst_30 : f32 to vector<2x1xf32>
      %99 = arith.cmpf ogt, %13, %98 : vector<2x1xf32>
      %cst_31 = arith.constant 0.000000e+00 : f32
      %100 = vector.shape_cast %99 : vector<2x1xi1> to vector<2x1xi1>
      %101 = vector.broadcast %100 : vector<2x1xi1> to vector<2x32xi1>
      %102 = vector.broadcast %cst_31 : f32 to vector<2x32xf32>
      %103 = arith.select %101, %102, %87 : vector<2x32xi1>, vector<2x32xf32>
      %104 = arith.index_cast %7 : i32 to index
      %c0_32 = arith.constant 0 : index
      %c0_33 = arith.constant 0 : index
      %105 = vector.load %arg8[%104, %c0_32, %c0_33] : memref<8x2x32xf32, #tpu.memory_space<vmem>>, vector<1x2x32xf32>
      %106 = vector.shape_cast %105 : vector<1x2x32xf32> to vector<2x32xf32>
      %107 = vector.shape_cast %103 : vector<2x32xf32> to vector<1x2x32xf32>
      tpu.vector_store %arg8[%104, %c0_32, %c0_33], %107 {strides = array<i32>} : memref<8x2x32xf32, #tpu.memory_space<vmem>>, vector<1x2x32xf32>,
      scf.yield %82, %87 : vector<2x32xf32>, vector<2x32xf32>
    }
    %c8_i32_7 = arith.constant 8 : i32
    return
  }
}

module attributes {stable_mosaic.version = 11 : i64} {
  func.func @_matmul_bias_kernel(%arg0: i32, %arg1: memref<16x64xf32, #tpu.memory_space<vmem>>, %arg2: memref<64x32xf32, #tpu.memory_space<vmem>>, %arg3: memref<1x32xf32, #tpu.memory_space<vmem>>, %arg4: memref<16x32xf32, #tpu.memory_space<vmem>>) attributes {dimension_semantics = [#tpu.dimension_semantics<parallel>], iteration_bounds = array<i64: 1>, scalar_prefetch = 0 : i64, scratch_operands = 0 : i64, tpu.core_type = #tpu.core_type<tc>, window_params = [{transform_indices = @transform_0, window_bounds = array<i64: 16, 64>}, {pipeline_mode = #tpu.pipeline_mode<synchronous>, transform_indices = @transform_1, window_bounds = array<i64: 64, 32>}, {pipeline_mode = #tpu.pipeline_mode<synchronous>, transform_indices = @transform_2, window_bounds = array<i64: 1, 32>}, {transform_indices = @transform_3, window_bounds = array<i64: 16, 32>}]} {
    %c0 = arith.constant 0 : index
    %c0_0 = arith.constant 0 : index
    %0 = vector.load %arg1[%c0, %c0_0] : memref<16x64xf32, #tpu.memory_space<vmem>>, vector<16x64xf32>
    %c0_1 = arith.constant 0 : index
    %c0_2 = arith.constant 0 : index
    %1 = vector.load %arg2[%c0_1, %c0_2] : memref<64x32xf32, #tpu.memory_space<vmem>>, vector<64x32xf32>
    %cst = arith.constant dense<0.000000e+00> : vector<16x32xf32>
    %2 = tpu.matmul %0, %1, %cst {dimension_numbers = #tpu.dot_dimension_numbers<[1], [0], [0], [1], [0, 0, 1, 1], [], []>} : vector<16x64xf32>, vector<64x32xf32>, vector<16x32xf32> -> vector<16x32xf32>
    %c0_3 = arith.constant 0 : index
    %c0_4 = arith.constant 0 : index
    %3 = vector.load %arg3[%c0_3, %c0_4] : memref<1x32xf32, #tpu.memory_space<vmem>>, vector<1x32xf32>
    %4 = vector.broadcast %3 : vector<1x32xf32> to vector<16x32xf32>
    %5 = arith.addf %2, %4 : vector<16x32xf32>
    %c0_5 = arith.constant 0 : index
    %c0_6 = arith.constant 0 : index
    %6 = vector.load %arg4[%c0_5, %c0_6] : memref<16x32xf32, #tpu.memory_space<vmem>>, vector<16x32xf32>
    tpu.vector_store %arg4[%c0_5, %c0_6], %5 {strides = array<i32>} : memref<16x32xf32, #tpu.memory_space<vmem>>, vector<16x32xf32>,
    return
  }
  func.func @transform_0(%arg0: i32) -> (i32, i32) {
    %c0_i32 = arith.constant 0 : i32
    %c0_i32_0 = arith.constant 0 : i32
    return %arg0, %c0_i32 : i32, i32
  }
  func.func @transform_1(%arg0: i32) -> (i32, i32) {
    %c0_i32 = arith.constant 0 : i32
    %c0_i32_0 = arith.constant 0 : i32
    %c0_i32_1 = arith.constant 0 : i32
    return %c0_i32, %c0_i32_0 : i32, i32
  }
  func.func @transform_2(%arg0: i32) -> (i32, i32) {
    %c0_i32 = arith.constant 0 : i32
    %c0_i32_0 = arith.constant 0 : i32
    %c0_i32_1 = arith.constant 0 : i32
    return %c0_i32, %c0_i32_0 : i32, i32
  }
  func.func @transform_3(%arg0: i32) -> (i32, i32) {
    %c0_i32 = arith.constant 0 : i32
    %c0_i32_0 = arith.constant 0 : i32
    return %arg0, %c0_i32 : i32, i32
  }
}

module attributes {stable_mosaic.version = 11 : i64} {
  func.func @_matmul_bias_kernel(%arg0: i32, %arg1: memref<16x32xf32, #tpu.memory_space<vmem>>, %arg2: memref<32x96xf32, #tpu.memory_space<vmem>>, %arg3: memref<1x96xf32, #tpu.memory_space<vmem>>, %arg4: memref<16x96xf32, #tpu.memory_space<vmem>>) attributes {dimension_semantics = [#tpu.dimension_semantics<parallel>], iteration_bounds = array<i64: 1>, scalar_prefetch = 0 : i64, scratch_operands = 0 : i64, tpu.core_type = #tpu.core_type<tc>, window_params = [{transform_indices = @transform_0, window_bounds = array<i64: 16, 32>}, {pipeline_mode = #tpu.pipeline_mode<synchronous>, transform_indices = @transform_1, window_bounds = array<i64: 32, 96>}, {pipeline_mode = #tpu.pipeline_mode<synchronous>, transform_indices = @transform_2, window_bounds = array<i64: 1, 96>}, {transform_indices = @transform_3, window_bounds = array<i64: 16, 96>}]} {
    %c0 = arith.constant 0 : index
    %c0_0 = arith.constant 0 : index
    %0 = vector.load %arg1[%c0, %c0_0] : memref<16x32xf32, #tpu.memory_space<vmem>>, vector<16x32xf32>
    %c0_1 = arith.constant 0 : index
    %c0_2 = arith.constant 0 : index
    %1 = vector.load %arg2[%c0_1, %c0_2] : memref<32x96xf32, #tpu.memory_space<vmem>>, vector<32x96xf32>
    %cst = arith.constant dense<0.000000e+00> : vector<16x96xf32>
    %2 = tpu.matmul %0, %1, %cst {dimension_numbers = #tpu.dot_dimension_numbers<[1], [0], [0], [1], [0, 0, 1, 1], [], []>} : vector<16x32xf32>, vector<32x96xf32>, vector<16x96xf32> -> vector<16x96xf32>
    %c0_3 = arith.constant 0 : index
    %c0_4 = arith.constant 0 : index
    %3 = vector.load %arg3[%c0_3, %c0_4] : memref<1x96xf32, #tpu.memory_space<vmem>>, vector<1x96xf32>
    %4 = vector.broadcast %3 : vector<1x96xf32> to vector<16x96xf32>
    %5 = arith.addf %2, %4 : vector<16x96xf32>
    %c0_5 = arith.constant 0 : index
    %c0_6 = arith.constant 0 : index
    %6 = vector.load %arg4[%c0_5, %c0_6] : memref<16x96xf32, #tpu.memory_space<vmem>>, vector<16x96xf32>
    tpu.vector_store %arg4[%c0_5, %c0_6], %5 {strides = array<i32>} : memref<16x96xf32, #tpu.memory_space<vmem>>, vector<16x96xf32>,
    return
  }
  func.func @transform_0(%arg0: i32) -> (i32, i32) {
    %c0_i32 = arith.constant 0 : i32
    %c0_i32_0 = arith.constant 0 : i32
    return %arg0, %c0_i32 : i32, i32
  }
  func.func @transform_1(%arg0: i32) -> (i32, i32) {
    %c0_i32 = arith.constant 0 : i32
    %c0_i32_0 = arith.constant 0 : i32
    %c0_i32_1 = arith.constant 0 : i32
    return %c0_i32, %c0_i32_0 : i32, i32
  }
  func.func @transform_2(%arg0: i32) -> (i32, i32) {
    %c0_i32 = arith.constant 0 : i32
    %c0_i32_0 = arith.constant 0 : i32
    %c0_i32_1 = arith.constant 0 : i32
    return %c0_i32, %c0_i32_0 : i32, i32
  }
  func.func @transform_3(%arg0: i32) -> (i32, i32) {
    %c0_i32 = arith.constant 0 : i32
    %c0_i32_0 = arith.constant 0 : i32
    return %arg0, %c0_i32 : i32, i32
  }
}

module attributes {stable_mosaic.version = 11 : i64} {
  func.func @_cgru_rec_kernel(%arg0: memref<8x2x96xf32, #tpu.memory_space<vmem>>, %arg1: memref<2x8x64xf32, #tpu.memory_space<vmem>>, %arg2: memref<2x8x32xf32, #tpu.memory_space<vmem>>, %arg3: memref<2x1x8xf32, #tpu.memory_space<vmem>>, %arg4: memref<2x32xf32, #tpu.memory_space<vmem>>, %arg5: memref<32x96xf32, #tpu.memory_space<vmem>>, %arg6: memref<1x96xf32, #tpu.memory_space<vmem>>, %arg7: memref<32x32xf32, #tpu.memory_space<vmem>>, %arg8: memref<1x32xf32, #tpu.memory_space<vmem>>, %arg9: memref<1x32xf32, #tpu.memory_space<vmem>>, %arg10: memref<64x96xf32, #tpu.memory_space<vmem>>, %arg11: memref<32x96xf32, #tpu.memory_space<vmem>>, %arg12: memref<1x96xf32, #tpu.memory_space<vmem>>, %arg13: memref<1x96xf32, #tpu.memory_space<vmem>>, %arg14: memref<8x2x32xf32, #tpu.memory_space<vmem>>, %arg15: memref<8x2x64xf32, #tpu.memory_space<vmem>>) attributes {dimension_semantics = [], scalar_prefetch = 0 : i64, scratch_operands = 0 : i64, tpu.core_type = #tpu.core_type<tc>} {
    %c0 = arith.constant 0 : index
    %c0_0 = arith.constant 0 : index
    %c0_1 = arith.constant 0 : index
    %0 = vector.load %arg1[%c0, %c0_0, %c0_1] : memref<2x8x64xf32, #tpu.memory_space<vmem>>, vector<2x8x64xf32>
    %c0_2 = arith.constant 0 : index
    %c0_3 = arith.constant 0 : index
    %c0_4 = arith.constant 0 : index
    %1 = vector.load %arg2[%c0_2, %c0_3, %c0_4] : memref<2x8x32xf32, #tpu.memory_space<vmem>>, vector<2x8x32xf32>
    %c0_5 = arith.constant 0 : index
    %c0_6 = arith.constant 0 : index
    %c0_7 = arith.constant 0 : index
    %2 = vector.load %arg3[%c0_5, %c0_6, %c0_7] : memref<2x1x8xf32, #tpu.memory_space<vmem>>, vector<2x1x8xf32>
    %c0_8 = arith.constant 0 : index
    %c0_9 = arith.constant 0 : index
    %3 = vector.load %arg5[%c0_8, %c0_9] : memref<32x96xf32, #tpu.memory_space<vmem>>, vector<32x96xf32>
    %c0_10 = arith.constant 0 : index
    %c0_11 = arith.constant 0 : index
    %4 = vector.load %arg6[%c0_10, %c0_11] : memref<1x96xf32, #tpu.memory_space<vmem>>, vector<1x96xf32>
    %c0_12 = arith.constant 0 : index
    %c0_13 = arith.constant 0 : index
    %5 = vector.load %arg7[%c0_12, %c0_13] : memref<32x32xf32, #tpu.memory_space<vmem>>, vector<32x32xf32>
    %c0_14 = arith.constant 0 : index
    %c0_15 = arith.constant 0 : index
    %6 = vector.load %arg8[%c0_14, %c0_15] : memref<1x32xf32, #tpu.memory_space<vmem>>, vector<1x32xf32>
    %c0_16 = arith.constant 0 : index
    %c0_17 = arith.constant 0 : index
    %7 = vector.load %arg9[%c0_16, %c0_17] : memref<1x32xf32, #tpu.memory_space<vmem>>, vector<1x32xf32>
    %8 = vector.shape_cast %7 : vector<1x32xf32> to vector<1x1x32xf32>
    %9 = vector.shape_cast %8 : vector<1x1x32xf32> to vector<1x1x32xf32>
    %10 = vector.broadcast %9 : vector<1x1x32xf32> to vector<2x1x32xf32>
    %c0_18 = arith.constant 0 : index
    %c0_19 = arith.constant 0 : index
    %11 = vector.load %arg10[%c0_18, %c0_19] : memref<64x96xf32, #tpu.memory_space<vmem>>, vector<64x96xf32>
    %c0_20 = arith.constant 0 : index
    %c0_21 = arith.constant 0 : index
    %12 = vector.load %arg11[%c0_20, %c0_21] : memref<32x96xf32, #tpu.memory_space<vmem>>, vector<32x96xf32>
    %c0_22 = arith.constant 0 : index
    %c0_23 = arith.constant 0 : index
    %13 = vector.load %arg12[%c0_22, %c0_23] : memref<1x96xf32, #tpu.memory_space<vmem>>, vector<1x96xf32>
    %c0_24 = arith.constant 0 : index
    %c0_25 = arith.constant 0 : index
    %14 = vector.load %arg13[%c0_24, %c0_25] : memref<1x96xf32, #tpu.memory_space<vmem>>, vector<1x96xf32>
    %c0_26 = arith.constant 0 : index
    %c0_27 = arith.constant 0 : index
    %15 = vector.load %arg4[%c0_26, %c0_27] : memref<2x32xf32, #tpu.memory_space<vmem>>, vector<2x32xf32>
    %c0_i32 = arith.constant 0 : i32
    %c8_i32 = arith.constant 8 : i32
    %16 = arith.addi %c0_i32, %c8_i32 : i32
    %c1_i32 = arith.constant 1 : i32
    %17 = scf.for %arg16 = %c0_i32 to %16 step %c1_i32 iter_args(%arg17 = %15) -> (vector<2x32xf32>)  : i32 {
      %18 = arith.index_cast %arg16 : i32 to index
      %c0_29 = arith.constant 0 : index
      %c0_30 = arith.constant 0 : index
      %19 = vector.load %arg0[%18, %c0_29, %c0_30] : memref<8x2x96xf32, #tpu.memory_space<vmem>>, vector<1x2x96xf32>
      %20 = vector.shape_cast %19 : vector<1x2x96xf32> to vector<2x96xf32>
      %cst = arith.constant dense<0.000000e+00> : vector<2x96xf32>
      %21 = tpu.matmul %arg17, %3, %cst {dimension_numbers = #tpu.dot_dimension_numbers<[1], [0], [0], [1], [0, 0, 1, 1], [], []>} : vector<2x32xf32>, vector<32x96xf32>, vector<2x96xf32> -> vector<2x96xf32>
      %22 = vector.broadcast %4 : vector<1x96xf32> to vector<2x96xf32>
      %23 = arith.addf %21, %22 : vector<2x96xf32>
      %24 = vector.extract_strided_slice %20 {offsets = [0, 0], sizes = [2, 32], strides = [1, 1]} : vector<2x96xf32> to vector<2x32xf32>
      %25 = vector.extract_strided_slice %23 {offsets = [0, 0], sizes = [2, 32], strides = [1, 1]} : vector<2x96xf32> to vector<2x32xf32>
      %26 = arith.addf %24, %25 : vector<2x32xf32>
      %27 = arith.negf %26 : vector<2x32xf32>
      %28 = math.exp %27 : vector<2x32xf32>
      %cst_31 = arith.constant 1.000000e+00 : f32
      %29 = vector.broadcast %cst_31 : f32 to vector<2x32xf32>
      %30 = arith.addf %29, %28 : vector<2x32xf32>
      %31 = arith.divf %29, %30 : vector<2x32xf32>
      %32 = vector.extract_strided_slice %20 {offsets = [0, 32], sizes = [2, 32], strides = [1, 1]} : vector<2x96xf32> to vector<2x32xf32>
      %33 = vector.extract_strided_slice %23 {offsets = [0, 32], sizes = [2, 32], strides = [1, 1]} : vector<2x96xf32> to vector<2x32xf32>
      %34 = arith.addf %32, %33 : vector<2x32xf32>
      %35 = arith.negf %34 : vector<2x32xf32>
      %36 = math.exp %35 : vector<2x32xf32>
      %cst_32 = arith.constant 1.000000e+00 : f32
      %37 = vector.broadcast %cst_32 : f32 to vector<2x32xf32>
      %38 = arith.addf %37, %36 : vector<2x32xf32>
      %39 = arith.divf %37, %38 : vector<2x32xf32>
      %40 = vector.extract_strided_slice %20 {offsets = [0, 64], sizes = [2, 32], strides = [1, 1]} : vector<2x96xf32> to vector<2x32xf32>
      %41 = vector.extract_strided_slice %23 {offsets = [0, 64], sizes = [2, 32], strides = [1, 1]} : vector<2x96xf32> to vector<2x32xf32>
      %42 = arith.mulf %31, %41 : vector<2x32xf32>
      %43 = arith.addf %40, %42 : vector<2x32xf32>
      %44 = math.tanh %43 : vector<2x32xf32>
      %cst_33 = arith.constant 1.000000e+00 : f32
      %45 = vector.broadcast %cst_33 : f32 to vector<2x32xf32>
      %46 = arith.subf %45, %39 : vector<2x32xf32>
      %47 = arith.mulf %46, %44 : vector<2x32xf32>
      %48 = arith.mulf %39, %arg17 : vector<2x32xf32>
      %49 = arith.addf %47, %48 : vector<2x32xf32>
      %cst_34 = arith.constant dense<0.000000e+00> : vector<2x32xf32>
      %50 = tpu.matmul %49, %5, %cst_34 {dimension_numbers = #tpu.dot_dimension_numbers<[1], [0], [0], [1], [0, 0, 1, 1], [], []>} : vector<2x32xf32>, vector<32x32xf32>, vector<2x32xf32> -> vector<2x32xf32>
      %51 = vector.broadcast %6 : vector<1x32xf32> to vector<2x32xf32>
      %52 = arith.addf %50, %51 : vector<2x32xf32>
      %53 = vector.shape_cast %52 : vector<2x32xf32> to vector<2x1x32xf32>
      %54 = vector.broadcast %53 : vector<2x1x32xf32> to vector<2x8x32xf32>
      %55 = arith.addf %1, %54 : vector<2x8x32xf32>
      %56 = math.tanh %55 : vector<2x8x32xf32>
      "tpu.trace_start"() <{level = 10 : i32, message = "bkh,bsh->bks"}> : () -> ()
      %cst_35 = arith.constant dense<0.000000e+00> : vector<2x1x8xf32>
      %57 = tpu.matmul %10, %56, %cst_35 {dimension_numbers = #tpu.dot_dimension_numbers<[2], [2], [1], [1], [0, 0, 0, 1, 1, 1], [0], [0]>} : vector<2x1x32xf32>, vector<2x8x32xf32>, vector<2x1x8xf32> -> vector<2x1x8xf32>
      %cst_36 = arith.constant 5.000000e-01 : f32
      "tpu.trace_stop"() : () -> ()
      %58 = vector.broadcast %cst_36 : f32 to vector<2x1x8xf32>
      %59 = arith.cmpf ogt, %2, %58 : vector<2x1x8xf32>
      %cst_37 = arith.constant -9.99999984E+17 : f32
      %60 = vector.broadcast %cst_37 : f32 to vector<2x1x8xf32>
      %61 = arith.select %59, %60, %57 : vector<2x1x8xi1>, vector<2x1x8xf32>
      %cst_38 = arith.constant dense<0xFF800000> : vector<2x1xf32>
      %62 = vector.multi_reduction <maximumf>, %61, %cst_38 [2] : vector<2x1x8xf32> to vector<2x1xf32>
      %63 = vector.shape_cast %62 : vector<2x1xf32> to vector<2x1x1xf32>
      %64 = vector.broadcast %63 : vector<2x1x1xf32> to vector<2x1x8xf32>
      %65 = arith.subf %61, %64 : vector<2x1x8xf32>
      %66 = math.exp %65 : vector<2x1x8xf32>
      %cst_39 = arith.constant dense<0.000000e+00> : vector<2x1xf32>
      %67 = vector.multi_reduction <add>, %66, %cst_39 [2] : vector<2x1x8xf32> to vector<2x1xf32>
      %68 = vector.shape_cast %67 : vector<2x1xf32> to vector<2x1x1xf32>
      %69 = vector.broadcast %68 : vector<2x1x1xf32> to vector<2x1x8xf32>
      %70 = arith.divf %66, %69 : vector<2x1x8xf32>
      "tpu.trace_start"() <{level = 10 : i32, message = "bks,bsc->bkc"}> : () -> ()
      %cst_40 = arith.constant dense<0.000000e+00> : vector<2x1x64xf32>
      %71 = tpu.matmul %70, %0, %cst_40 {dimension_numbers = #tpu.dot_dimension_numbers<[2], [1], [1], [2], [0, 0, 0, 1, 1, 2], [0], [0]>} : vector<2x1x8xf32>, vector<2x8x64xf32>, vector<2x1x64xf32> -> vector<2x1x64xf32>
      "tpu.trace_stop"() : () -> ()
      %72 = vector.shape_cast %71 : vector<2x1x64xf32> to vector<2x64xf32>
      %cst_41 = arith.constant dense<0.000000e+00> : vector<2x96xf32>
      %73 = tpu.matmul %72, %11, %cst_41 {dimension_numbers = #tpu.dot_dimension_numbers<[1], [0], [0], [1], [0, 0, 1, 1], [], []>} : vector<2x64xf32>, vector<64x96xf32>, vector<2x96xf32> -> vector<2x96xf32>
      %74 = vector.broadcast %13 : vector<1x96xf32> to vector<2x96xf32>
      %75 = arith.addf %73, %74 : vector<2x96xf32>
      %cst_42 = arith.constant dense<0.000000e+00> : vector<2x96xf32>
      %76 = tpu.matmul %49, %12, %cst_42 {dimension_numbers = #tpu.dot_dimension_numbers<[1], [0], [0], [1], [0, 0, 1, 1], [], []>} : vector<2x32xf32>, vector<32x96xf32>, vector<2x96xf32> -> vector<2x96xf32>
      %77 = vector.broadcast %14 : vector<1x96xf32> to vector<2x96xf32>
      %78 = arith.addf %76, %77 : vector<2x96xf32>
      %79 = vector.extract_strided_slice %75 {offsets = [0, 0], sizes = [2, 32], strides = [1, 1]} : vector<2x96xf32> to vector<2x32xf32>
      %80 = vector.extract_strided_slice %78 {offsets = [0, 0], sizes = [2, 32], strides = [1, 1]} : vector<2x96xf32> to vector<2x32xf32>
      %81 = arith.addf %79, %80 : vector<2x32xf32>
      %82 = arith.negf %81 : vector<2x32xf32>
      %83 = math.exp %82 : vector<2x32xf32>
      %cst_43 = arith.constant 1.000000e+00 : f32
      %84 = vector.broadcast %cst_43 : f32 to vector<2x32xf32>
      %85 = arith.addf %84, %83 : vector<2x32xf32>
      %86 = arith.divf %84, %85 : vector<2x32xf32>
      %87 = vector.extract_strided_slice %75 {offsets = [0, 32], sizes = [2, 32], strides = [1, 1]} : vector<2x96xf32> to vector<2x32xf32>
      %88 = vector.extract_strided_slice %78 {offsets = [0, 32], sizes = [2, 32], strides = [1, 1]} : vector<2x96xf32> to vector<2x32xf32>
      %89 = arith.addf %87, %88 : vector<2x32xf32>
      %90 = arith.negf %89 : vector<2x32xf32>
      %91 = math.exp %90 : vector<2x32xf32>
      %cst_44 = arith.constant 1.000000e+00 : f32
      %92 = vector.broadcast %cst_44 : f32 to vector<2x32xf32>
      %93 = arith.addf %92, %91 : vector<2x32xf32>
      %94 = arith.divf %92, %93 : vector<2x32xf32>
      %95 = vector.extract_strided_slice %75 {offsets = [0, 64], sizes = [2, 32], strides = [1, 1]} : vector<2x96xf32> to vector<2x32xf32>
      %96 = vector.extract_strided_slice %78 {offsets = [0, 64], sizes = [2, 32], strides = [1, 1]} : vector<2x96xf32> to vector<2x32xf32>
      %97 = arith.mulf %86, %96 : vector<2x32xf32>
      %98 = arith.addf %95, %97 : vector<2x32xf32>
      %99 = math.tanh %98 : vector<2x32xf32>
      %cst_45 = arith.constant 1.000000e+00 : f32
      %100 = vector.broadcast %cst_45 : f32 to vector<2x32xf32>
      %101 = arith.subf %100, %94 : vector<2x32xf32>
      %102 = arith.mulf %101, %99 : vector<2x32xf32>
      %103 = arith.mulf %94, %49 : vector<2x32xf32>
      %104 = arith.addf %102, %103 : vector<2x32xf32>
      %105 = arith.index_cast %arg16 : i32 to index
      %c0_46 = arith.constant 0 : index
      %c0_47 = arith.constant 0 : index
      %106 = vector.load %arg14[%105, %c0_46, %c0_47] : memref<8x2x32xf32, #tpu.memory_space<vmem>>, vector<1x2x32xf32>
      %107 = vector.shape_cast %106 : vector<1x2x32xf32> to vector<2x32xf32>
      %108 = vector.shape_cast %104 : vector<2x32xf32> to vector<1x2x32xf32>
      tpu.vector_store %arg14[%105, %c0_46, %c0_47], %108 {strides = array<i32>} : memref<8x2x32xf32, #tpu.memory_space<vmem>>, vector<1x2x32xf32>,
      %109 = arith.index_cast %arg16 : i32 to index
      %c0_48 = arith.constant 0 : index
      %c0_49 = arith.constant 0 : index
      %110 = vector.load %arg15[%109, %c0_48, %c0_49] : memref<8x2x64xf32, #tpu.memory_space<vmem>>, vector<1x2x64xf32>
      %111 = vector.shape_cast %110 : vector<1x2x64xf32> to vector<2x64xf32>
      %112 = vector.shape_cast %72 : vector<2x64xf32> to vector<1x2x64xf32>
      tpu.vector_store %arg15[%109, %c0_48, %c0_49], %112 {strides = array<i32>} : memref<8x2x64xf32, #tpu.memory_space<vmem>>, vector<1x2x64xf32>,
      scf.yield %104 : vector<2x32xf32>
    }
    %c8_i32_28 = arith.constant 8 : i32
    return
  }
}

module attributes {stable_mosaic.version = 11 : i64} {
  func.func @_matmul_bias_kernel(%arg0: i32, %arg1: memref<16x128xf32, #tpu.memory_space<vmem>>, %arg2: memref<128x32xf32, #tpu.memory_space<vmem>>, %arg3: memref<1x32xf32, #tpu.memory_space<vmem>>, %arg4: memref<16x32xf32, #tpu.memory_space<vmem>>) attributes {dimension_semantics = [#tpu.dimension_semantics<parallel>], iteration_bounds = array<i64: 1>, scalar_prefetch = 0 : i64, scratch_operands = 0 : i64, tpu.core_type = #tpu.core_type<tc>, window_params = [{transform_indices = @transform_0, window_bounds = array<i64: 16, 128>}, {pipeline_mode = #tpu.pipeline_mode<synchronous>, transform_indices = @transform_1, window_bounds = array<i64: 128, 32>}, {pipeline_mode = #tpu.pipeline_mode<synchronous>, transform_indices = @transform_2, window_bounds = array<i64: 1, 32>}, {transform_indices = @transform_3, window_bounds = array<i64: 16, 32>}]} {
    %c0 = arith.constant 0 : index
    %c0_0 = arith.constant 0 : index
    %0 = vector.load %arg1[%c0, %c0_0] : memref<16x128xf32, #tpu.memory_space<vmem>>, vector<16x128xf32>
    %c0_1 = arith.constant 0 : index
    %c0_2 = arith.constant 0 : index
    %1 = vector.load %arg2[%c0_1, %c0_2] : memref<128x32xf32, #tpu.memory_space<vmem>>, vector<128x32xf32>
    %cst = arith.constant dense<0.000000e+00> : vector<16x32xf32>
    %2 = tpu.matmul %0, %1, %cst {dimension_numbers = #tpu.dot_dimension_numbers<[1], [0], [0], [1], [0, 0, 1, 1], [], []>} : vector<16x128xf32>, vector<128x32xf32>, vector<16x32xf32> -> vector<16x32xf32>
    %c0_3 = arith.constant 0 : index
    %c0_4 = arith.constant 0 : index
    %3 = vector.load %arg3[%c0_3, %c0_4] : memref<1x32xf32, #tpu.memory_space<vmem>>, vector<1x32xf32>
    %4 = vector.broadcast %3 : vector<1x32xf32> to vector<16x32xf32>
    %5 = arith.addf %2, %4 : vector<16x32xf32>
    %6 = math.tanh %5 : vector<16x32xf32>
    %c0_5 = arith.constant 0 : index
    %c0_6 = arith.constant 0 : index
    %7 = vector.load %arg4[%c0_5, %c0_6] : memref<16x32xf32, #tpu.memory_space<vmem>>, vector<16x32xf32>
    tpu.vector_store %arg4[%c0_5, %c0_6], %6 {strides = array<i32>} : memref<16x32xf32, #tpu.memory_space<vmem>>, vector<16x32xf32>,
    return
  }
  func.func @transform_0(%arg0: i32) -> (i32, i32) {
    %c0_i32 = arith.constant 0 : i32
    %c0_i32_0 = arith.constant 0 : i32
    return %arg0, %c0_i32 : i32, i32
  }
  func.func @transform_1(%arg0: i32) -> (i32, i32) {
    %c0_i32 = arith.constant 0 : i32
    %c0_i32_0 = arith.constant 0 : i32
    %c0_i32_1 = arith.constant 0 : i32
    return %c0_i32, %c0_i32_0 : i32, i32
  }
  func.func @transform_2(%arg0: i32) -> (i32, i32) {
    %c0_i32 = arith.constant 0 : i32
    %c0_i32_0 = arith.constant 0 : i32
    %c0_i32_1 = arith.constant 0 : i32
    return %c0_i32, %c0_i32_0 : i32, i32
  }
  func.func @transform_3(%arg0: i32) -> (i32, i32) {
    %c0_i32 = arith.constant 0 : i32
    %c0_i32_0 = arith.constant 0 : i32
    return %arg0, %c0_i32 : i32, i32
  }
}

</mosaic_0001>

<bundles_post_ra>
// kernel: dl4mt_forward.9
= control target key start
LH: loop header
LB: loop body
LE: loop exit
PB: predicated region body
PF: predicated region fallthrough
CT: control target
= control target key end

     0   :  { %v21_v0 = vlaneseq  ;;  %vm52_vm0 = vcmask 58368   ;;  %v215_v12 = vmov 0.0|0.0   ;;  %vm216_vm1 = vmmov 0   ;;  %s285_s1 = inlined_call_operand.vmem [shape: f32[2,8], index: 1, kind: input, shape index: {}]   ;;  %s286_s2 = inlined_call_operand.vmem [shape: f32[64,32], index: 2, kind: input, shape index: {}]   ;;  %s287_s0 = inlined_call_operand.vmem [shape: f32[2,8,64], index: 0, kind: input, shape index: {}]   ;;  %s288_s3 = inlined_call_operand.vmem [shape: f32[1,32], index: 3, kind: input, shape index: {}]   ;;  %s289_s4 = inlined_call_operand.vmem [shape: f32[2,32], index: 4, kind: output, shape index: {}]  }
   0x1   :  { %v17_v1 = vld [vmem:[%s285_s1] sm:$0x3]  ;;  %v66_v10 = vld [vmem:[%s286_s2 + $0x8] sm:$0xff]  ;;  %194 = vmatprep.subr.bf16.mxu0 %v215_v12  ;;  %v67_v13 = vld [vmem:[%s286_s2 + $0x10] sm:$0xff]  ;;  %v217_v22 = vmov 0.0   ;;  %vm37_vm2 = vcmask 523264  }
   0x2   :  { %v18_v2 = vsub.f32 1.0, %v17_v1  ;;  %v22_v3 = vshrl.u32 %v21_v0, 7  ;;  %v65_v9 = vld [vmem:[%s286_s2] sm:$0xff]  ;;  %v68_v14 = vld [vmem:[%s286_s2 + $0x18] sm:$0xff]  ;;  %v70_v17 = vld [vmem:[%s286_s2 + $0x28] sm:$0xff]  ;;  %191 = vmatprep.mubr.msk.f32.mxu0 %vm216_vm1, %v217_v22  ;;  %vm83_vm3 = vcmask 1041409  }
   0x3   :  { %v195_v11 = vpack.c.bf16 %v66_v10, %v65_v9  ;;  %v198_v15 = vpack.c.bf16 %v68_v14, %v67_v13  ;;  %v69_v16 = vld [vmem:[%s286_s2 + $0x20] sm:$0xff]  ;;  %v71_v19 = vld [vmem:[%s286_s2 + $0x30] sm:$0xff]  ;;  %v72_v20 = vld [vmem:[%s286_s2 + $0x38] sm:$0xff]  ;;  %vm158_vm4 = vcmask 254976  }
   0x4   :  { %v53_v4 = vsel %vm52_vm0, %v18_v2, 0.0  ;;  %v23_v5 = vsub.s32 0, %v22_v3  ;;  %v30_v7 = vsub.s32 1, %v22_v3  ;;  %v201_v18 = vpack.c.bf16 %v70_v17, %v69_v16  ;;  %v19_v24 = vld [vmem:[%s287_s0] sm:$0xff]  ;;  %v20_v31 = vld [vmem:[%s287_s0 + $0x8] sm:$0xff] }
   0x5   :  { %54 = vadd.xlane.f32.xlu0 %v53_v4  ;;  %196 = vmatpush3.bf16.msra.mxu0 %v195_v11  ;;  %v204_v21 = vpack.c.bf16 %v72_v20, %v71_v19  ;;  %v164_v52 = vld [vmem:[%s288_s3] ss:$0 sm:$0xff] }
   0x6   :  { %v24_v6 = vrot.slane %v18_v2, %v23_v5  ;;  %v31_v8 = vrot.slane %v18_v2, %v30_v7  ;;  %197 = vmatprep.subr.bf16.mxu0 %v215_v12 }
   0x8   :  { %26 = vbcast.lane.b32.xlu1 %v24_v6, 256 }
   0x9   :  { %199 = vmatpush3.bf16.msra.mxu0 %v198_v15 }
   0xa   :  { %200 = vmatprep.subr.bf16.mxu0 %v215_v12 }
   0xd   :  { %202 = vmatpush3.bf16.msra.mxu0 %v201_v18 }
   0xe   :  { %203 = vmatprep.subr.bf16.mxu0 %v215_v12 }
  0x11   :  { %205 = vmatpush3.bf16.msra.mxu0 %v204_v21 }
  0x1b   :  { %33 = vbcast.lane.b32.xlu0 %v31_v8, 256 }
  0x7a   :  { %v27_v23 = vpop.permute.xlu1 %26 }
  0x7b   :  { %v35_v25 = vmul.f32 %v27_v23, %v19_v24 }
  0x7d   :  { %v38_v26 = vsel %vm37_vm2, %v35_v25, 0.0 }
  0x7e   :  { %v39_v27 = vrot.slane %v38_v26, 4 }
  0x80   :  { %v40_v30 = vadd.f32 %v39_v27, %v38_v26 }
  0x82   :  { %v41_v35 = vrot.slane %v40_v30, 2 }
  0x84   :  { %v42_v38 = vadd.f32 %v41_v35, %v40_v30 }
  0x86   :  { %v43_v41 = vrot.slane %v42_v38, 1 }
  0x88   :  { %v44_v45 = vadd.f32 %v43_v41, %v42_v38 }
  0x92   :  { %v55_v28 = vpop.xlane.xlu0 %54 }
  0x93   :  { %v56_v29 = vmax.f32 %v55_v28, 1.0 }
  0x95   :  { %v58_v33 = vrot.slane %v56_v29, 1  ;;  %209 = vrcp.f32 %v56_v29 }
  0x96   :  { %v34_v32 = vpop.permute.xlu0 %33 }
  0x97   :  { %v36_v34 = vmul.f32 %v34_v32, %v20_v31  ;;  %211 = vrcp.f32 %v58_v33 }
  0x99   :  { %v45_v36 = vsel %vm37_vm2, %v36_v34, 0.0 }
  0x9a   :  { %v46_v37 = vrot.slane %v45_v36, 4 }
  0x9c   :  { %v47_v39 = vadd.f32 %v46_v37, %v45_v36 }
  0x9e   :  { %v48_v40 = vrot.slane %v47_v39, 2 }
  0x9f   :  { %v210_v44 = vpop.eup %209 }
  0xa0   :  { %v49_v42 = vadd.f32 %v48_v40, %v47_v39  ;;  %v62_v49 = vmul.f32 %v210_v44, %v44_v45 }
  0xa1   :  { %v212_v47 = vpop.eup %211 }
  0xa2   :  { %v50_v43 = vrot.slane %v49_v42, 1 }
  0xa4   :  { %v51_v46 = vadd.f32 %v50_v43, %v49_v42 }
  0xa6   :  { %v64_v48 = vmul.f32 %v212_v47, %v51_v46 }
  0xa8   :  { %v82_v50 = vrot.slane %v64_v48, 7 }
  0xaa   :  { %v84_v51 = vsel %vm83_vm3, %v82_v50, %v62_v49 }
  0xab   :  { %192 = vmatmul.mubr.msk.f32.vlgmr.msra.gmra.mrb[0].mxu0 %vm37_vm2, %v84_v51 }
 0x17e   :  { %v153_v53 = vpop.f32.mrb[0].mxu0 }
 0x17f   :  { %v154_v54 = vadd.f32 %v164_v52, %v153_v53  ;;  %v193_v55 = vpop.f32.mrb[1].mxu0 }
 0x181   :  { %213 = vtanh.f32 %v154_v54 }
 0x18b   :  { %v214_v56 = vpop.eup %213 }
 0x18c   :  { %159 = vst.msk [vmem:[%s289_s4] sm:$0x3] %vm158_vm4, %v214_v56 }

// kernel: dl4mt_forward.10
= control target key start
LH: loop header
LB: loop body
LE: loop exit
PB: predicated region body
PF: predicated region fallthrough
CT: control target
= control target key end

     0   :  { %vm31_vm0 = vcmask 523264   ;;  %vm113_vm1 = vcmask 261120   ;;  %s229_s1 = inlined_call_operand.vmem [shape: f32[64,32], index: 1, kind: input, shape index: {}]   ;;  %s230_s0 = inlined_call_operand.vmem [shape: f32[16,64], index: 0, kind: input, shape index: {}]   ;;  %s231_s2 = inlined_call_operand.vmem [shape: f32[1,32], index: 2, kind: input, shape index: {}]   ;;  %s232_s3 = inlined_call_operand.vmem [shape: f32[16,32], index: 3, kind: output, shape index: {}]  }
   0x1   :  { %v16_v0 = vld [vmem:[%s229_s1] sm:$0xff]  ;;  %v17_v1 = vld [vmem:[%s229_s1 + $0x8] sm:$0xff]  ;;  %v18_v2 = vld [vmem:[%s229_s1 + $0x10] sm:$0xff] }
   0x2   :  { %v152_v3 = vpack.c.bf16 %v17_v1, %v16_v0  ;;  %v19_v4 = vld [vmem:[%s229_s1 + $0x18] sm:$0xff]  ;;  %v20_v6 = vld [vmem:[%s229_s1 + $0x20] sm:$0xff]  ;;  %v21_v7 = vld [vmem:[%s229_s1 + $0x28] sm:$0xff] }
   0x3   :  { %v156_v5 = vpack.c.bf16 %v19_v4, %v18_v2  ;;  %v14_v8 = vld [vmem:[%s230_s0] sm:$0xff]  ;;  %v160_v9 = vpack.c.bf16 %v21_v7, %v20_v6  ;;  %v22_v10 = vld [vmem:[%s229_s1 + $0x30] sm:$0xff]  ;;  %v23_v11 = vld [vmem:[%s229_s1 + $0x38] sm:$0xff] }
   0x4   :  { %153 = vmatprep.subr.bf16.mxu0 %v152_v3  ;;  %149 = vmatprep.mubr.msk.f32.mxu0 %vm31_vm0, %v14_v8  ;;  %v164_v12 = vpack.c.bf16 %v23_v11, %v22_v10  ;;  %v15_v13 = vld [vmem:[%s230_s0 + $0x8] sm:$0xff]  ;;  %v120_v14 = vld [vmem:[%s231_s2] ss:$0 sm:$0xff] }
   0x5   :  { %155 = vmatpush3.bf16.msra.mxu0 %v152_v3 }
   0x6   :  { %157 = vmatprep.subr.bf16.mxu0 %v156_v5 }
   0x9   :  { %159 = vmatpush3.bf16.msra.mxu0 %v156_v5 }
   0xa   :  { %161 = vmatprep.subr.bf16.mxu0 %v160_v9 }
   0xd   :  { %163 = vmatpush3.bf16.msra.mxu0 %v160_v9 }
   0xe   :  { %165 = vmatprep.subr.bf16.mxu0 %v164_v12 }
  0x11   :  { %167 = vmatpush3.bf16.msra.mxu0 %v164_v12 }
  0x14   :  { %150 = vmatmul.mubr.msk.f32.vlgmr.msra.gmra.mrb[0].mxu0 %vm31_vm0, %v15_v13 }
  0xe7   :  { %v151_v15 = vpop.f32.mrb[0].mxu0 }
  0xe8   :  { %v110_v16 = vadd.f32 %v151_v15, %v120_v14  ;;  %v104_v17 = vpop.f32.mrb[1].mxu0 }
  0xe9   :  { %v105_v18 = vadd.f32 %v120_v14, %v104_v17 }
  0xea   :  { %115 = vst.msk [vmem:[%s232_s3 + $0x8] sm:$0xff] %vm113_vm1, %v110_v16 }
  0xeb   :  { %114 = vst.msk [vmem:[%s232_s3] sm:$0xff] %vm113_vm1, %v105_v18 }

// kernel: dl4mt_forward.7
= control target key start
LH: loop header
LB: loop body
LE: loop exit
PB: predicated region body
PF: predicated region fallthrough
CT: control target
= control target key end

     0   :  { %v144_v3 = vmov 0.0   ;;  %vm36_vm0 = vcmask 261120   ;;  %v26_v15 = vlaneseq  ;;  %vm121_vm1 = vcmask 523264   ;;  %s210_s1 = inlined_call_operand.vmem [shape: f32[32,192], index: 1, kind: input, shape index: {}]   ;;  %s211_s0 = inlined_call_operand.vmem [shape: f32[16,32], index: 0, kind: input, shape index: {}]   ;;  %s212_s2 = inlined_call_operand.vmem [shape: f32[1,192], index: 2, kind: input, shape index: {}]   ;;  %s213_s3 = inlined_call_operand.vmem [shape: f32[16,192], index: 3, kind: output, shape index: {}]  }
   0x1   :  { %v17_v0 = vld [vmem:[%s210_s1 + $0x8] sm:$0xff]  ;;  %v19_v1 = vld [vmem:[%s210_s1 + $0x18] sm:$0xff]  ;;  %v16_v2 = vld [vmem:[%s210_s1] sm:$0xff]  ;;  %107 = vmatprep.mubr.f32.mxu0 %v144_v3  ;;  %113 = vmatprep.mubr.f32.mxu1 %v144_v3 }
   0x2   :  { %v131_v4 = vpack.c.bf16 %v19_v1, %v17_v0  ;;  %v18_v5 = vld [vmem:[%s210_s1 + $0x10] sm:$0xff]  ;;  %v21_v6 = vld [vmem:[%s210_s1 + $0x28] sm:$0xff]  ;;  %v23_v7 = vld [vmem:[%s210_s1 + $0x38] sm:$0xff]  ;;  %v27_v16 = vshrl.u32 %v26_v15, 7 }
   0x3   :  { %v133_v8 = vpack.c.bf16 %v18_v5, %v16_v2  ;;  %v135_v9 = vpack.c.bf16 %v23_v7, %v21_v6  ;;  %v20_v10 = vld [vmem:[%s210_s1 + $0x20] sm:$0xff]  ;;  %v22_v11 = vld [vmem:[%s210_s1 + $0x30] sm:$0xff]  ;;  %v15_v14 = vld [vmem:[%s211_s0 + $0x8] sm:$0xff] }
   0x4   :  { %132 = vmatprep.subr.bf16.mxu0 %v131_v4  ;;  %139 = vmatprep.subr.bf16.mxu1 %v131_v4  ;;  %v137_v12 = vpack.c.bf16 %v22_v11, %v20_v10  ;;  %v14_v13 = vld [vmem:[%s211_s0] sm:$0xff]  ;;  %v28_v17 = vsub.s32 0, %v27_v16  ;;  %v32_v19 = vsub.s32 1, %v27_v16 }
   0x5   :  { %134 = vmatpush1.bf16.msra.mxu0 %v133_v8  ;;  %141 = vmatpush1.bf16.msra.mxu1 %v133_v8  ;;  %v24_v18 = vld [vmem:[%s212_s2] sm:$0x3] }
   0x6   :  { %136 = vmatprep.subr.bf16.mxu0 %v135_v9  ;;  %140 = vmatprep.subr.bf16.mxu1 %v135_v9  ;;  %v29_v20 = vrot.slane %v24_v18, %v28_v17  ;;  %v33_v21 = vrot.slane %v24_v18, %v32_v19 }
   0x9   :  { %138 = vmatpush1.bf16.msra.mxu0 %v137_v12  ;;  %142 = vmatpush1.bf16.msra.mxu1 %v137_v12 }
   0xc   :  { %129 = vmatmul.mubr.msk.f32.vlgmr.msra.gmra.mrb[0].mxu0 %vm36_vm0, %v14_v13  ;;  %130 = vmatmul.mubr.msk.f32.vlgmr.msra.gmra.mrb[0].mxu1 %vm36_vm0, %v15_v14 }
  0xdf   :  { %v109_v22 = vpop.f32.mrb[0].mxu0  ;;  %v115_v23 = vpop.f32.mrb[0].mxu1 }
  0xe0   :  { %v110_v24 = vadd.f32 %v109_v22, %v29_v20  ;;  %v116_v25 = vadd.f32 %v115_v23, %v29_v20  ;;  %v111_v26 = vpop.f32.mrb[1].mxu0  ;;  %v117_v27 = vpop.f32.mrb[1].mxu1 }
  0xe1   :  { %v112_v28 = vadd.f32 %v111_v26, %v33_v21  ;;  %v118_v29 = vadd.f32 %v117_v27, %v33_v21 }
  0xe2   :  { %120 = vst [vmem:[%s213_s3] sm:$0xff] %v110_v24  ;;  %123 = vst [vmem:[%s213_s3 + $0x10] sm:$0xff] %v116_v25 }
  0xe3   :  { %122 = vst.msk [vmem:[%s213_s3 + $0x8] sm:$0xff] %vm121_vm1, %v112_v28  ;;  %124 = vst.msk [vmem:[%s213_s3 + $0x18] sm:$0xff] %vm121_vm1, %v118_v29 }

// kernel: dl4mt_forward.8
= control target key start
LH: loop header
LB: loop body
LE: loop exit
PB: predicated region body
PF: predicated region fallthrough
CT: control target
= control target key end

     0   :  { %v553_v10 = vmov 0.0   ;;  %v555_v11 = vmov 0.0   ;;  %s557_s23 = smov 0   ;;  %s631_s0 = inlined_call_operand.vmem [shape: f32[8,2,96], index: 0, kind: input, shape index: {}]   ;;  %s632_s1 = inlined_call_operand.vmem [shape: f32[8,2,96], index: 1, kind: input, shape index: {}]   ;;  %s633_s2 = inlined_call_operand.vmem [shape: f32[8,2,1], index: 2, kind: input, shape index: {}]   ;;  %s634_s3 = inlined_call_operand.vmem [shape: f32[32,96], index: 3, kind: input, shape index: {}]   ;;  %s635_s4 = inlined_call_operand.vmem [shape: f32[1,96], index: 4, kind: input, shape index: {}]   ;;  %s636_s5 = inlined_call_operand.vmem [shape: f32[32,96], index: 5, kind: input, shape index: {}]   ;;  %s637_s7 = inlined_call_operand.vmem [shape: f32[8,2,32], index: 7, kind: output, shape index: {0}]   ;;  %s638_s8 = inlined_call_operand.vmem [shape: f32[8,2,32], index: 8, kind: output, shape index: {1}]   ;;  %s639_s6 = inlined_call_operand.vmem [shape: f32[1,96], index: 6, kind: input, shape index: {}]  }
   0x1   :  { %v506_v0 = vld [vmem:[%s634_s3] sm:$0xff]  ;;  %v511_v1 = vld [vmem:[%s634_s3 + $0x8] sm:$0xff]  ;;  %v516_v2 = vld [vmem:[%s634_s3 + $0x10] sm:$0xff] }
   0x2   :  { %v521_v3 = vld [vmem:[%s634_s3 + $0x18] sm:$0xff]  ;;  %v526_v4 = vld [vmem:[%s635_s4] ss:$0 sm:$0xff]  ;;  %v536_v6 = vld [vmem:[%s636_s5 + $0x8] sm:$0xff] }
   0x3   :  { %v531_v5 = vld [vmem:[%s636_s5] sm:$0xff]  ;;  %v541_v7 = vld [vmem:[%s636_s5 + $0x10] sm:$0xff]  ;;  %v546_v8 = vld [vmem:[%s636_s5 + $0x18] sm:$0xff] }
   0x4   :  { %v551_v9 = vld [vmem:[%s639_s6] ss:$0 sm:$0xff] }
   0x5 LB: > { %v373_v12 = vpack.c.bf16 %v511_v1, %v506_v0  ;;  %v452_v13 = vmov 0.0|0.0   ;;  %v379_v14 = vpack.c.bf16 %v536_v6, %v531_v5  ;;  %s453_s5 = smov 96   ;;  %v376_v15 = vpack.c.bf16 %v521_v3, %v516_v2  ;;  %s457_s6 = smov 64   ;;  %s450_s23 = sphi %s557_s23, %s43_s23   ;;  %v446_v11 = vphi %v555_v11, %v278_v11   ;;  %v442_v10 = vphi %v553_v10, %v285_v10  }
   0x6   : > { %372 = vmatprep.subr.bf16.mxu0 %v452_v13  ;;  %378 = vmatprep.subr.bf16.mxu1 %v452_v13  ;;  %v382_v16 = vpack.c.bf16 %v546_v8, %v541_v7  ;;  %vm454_vm0 = vmmov 0   ;;  %v455_v17 = vmov 0.0   ;;  %vm64_vm1 = vcmask 261120   ;;  %s585_s24 = sshll.u32 %s450_s23, 1  ;;  %s46_s25 = ssub.s32 7, %s450_s23 }
   0x7   : > { %62 = vrot.lane.b32.xlu0 %v446_v11, %s453_s5  ;;  %374 = vmatpush3.bf16.msra.mxu0 %v373_v12  ;;  %v456_v20 = vmov 0   ;;  %s53_s28 = scalar_lea.vmem %s631_s0, %s585_s24  ;;  %s592_s29 = sshll.u32 %s46_s25, 1  ;;  %vm292_vm6 = vcmask 254976  }
   0x8   : > { %375 = vmatprep.subr.bf16.mxu0 %v452_v13  ;;  %380 = vmatpush3.bf16.msra.mxu1 %v379_v14  ;;  %v54_v27 = vld [vmem:[%s53_s28] sm:$0x3]  ;;  %s163_s10 = scalar_lea.vmem %s632_s1, %s592_s29  ;;  %s48_s13 = scalar_lea.vmem %s633_s2, %s585_s24 }
   0x9   : > { %358 = vmatprep.mubr.msk.f32.mxu0 %vm454_vm0, %v455_v17  ;;  %381 = vmatprep.subr.bf16.mxu1 %v452_v13  ;;  %v164_v29 = vld [vmem:[%s163_s10] sm:$0x3]  ;;  %s51_s16 = scalar_lea.vmem %s633_s2, %s592_s29  ;;  %s291_s19 = scalar_lea.vmem %s637_s7, %s585_s24 }
   0xa   : > { %369 = vmatprep.mubr.msk.f32.mxu1 %vm454_vm0, %v455_v17  ;;  %415 = vset.pattern.permute.xlu1 %v456_v20  ;;  %v49_v37 = vld [vmem:[%s48_s13] sm:$0x3]  ;;  %s299_s21 = scalar_lea.vmem %s638_s8, %s592_s29  ;;  %s43_s23 = sadd.s32 1, %s450_s23  }
   0xb   : > { %172 = vrot.lane.b32.xlu0 %v442_v10, %s453_s5  ;;  %377 = vmatpush3.bf16.msra.mxu0 %v376_v15  ;;  %vm272_vm2 = vcmp.gt.f32.partialorder %v49_v37, 0.5  ;;  %v52_v41 = vld [vmem:[%s51_s16] sm:$0x3]  ;;  %p40_p0 = scmp.ge.s32.totalorder %s43_s23, 8  }
   0xc   : > { %383 = vmatpush3.bf16.msra.mxu1 %v382_v16  ;;  %414 = vset.pattern.permute.xlu0 %v456_v20  ;;  %v273_v44 = vsel %vm272_vm2, 1, %v456_v20  ;;  %vm279_vm3 = vcmp.gt.f32.partialorder %v52_v41, 0.5 }
   0xd   : > { %v280_v46 = vsel %vm279_vm3, 1, %v456_v20 }
  0x79   : > { %v63_v18 = vpop.permute.xlu0 %62 }
  0x7a   : > { %359 = vmatmul.mubr.msk.f32.vlgmr.msra.gmra.mrb[0].mxu0 %vm64_vm1, %v63_v18 }
  0x7d   : > { %v173_v19 = vpop.permute.xlu0 %172 }
  0x7e   : > { %370 = vmatmul.mubr.msk.f32.vlgmr.msra.gmra.mrb[0].mxu1 %vm64_vm1, %v173_v19 }
 0x14d   : > { %v133_v21 = vpop.f32.mrb[0].mxu0 }
 0x14e   : > { %v134_v22 = vadd.f32 %v526_v4, %v133_v21  ;;  %v360_v23 = vpop.f32.mrb[1].mxu0 }
 0x150   : > { %145 = vrot.lane.b32.xlu1 %v134_v22, %s457_s6  ;;  %v137_v28 = vadd.f32 %v134_v22, %v54_v27 }
 0x151   : > { %v242_v24 = vpop.f32.mrb[0].mxu1 }
 0x152   : > { %v243_v25 = vadd.f32 %v551_v9, %v242_v24  ;;  %v371_v26 = vpop.f32.mrb[1].mxu1  ;;  %v336_v30 = vmul.f32 -1.442695, %v137_v28 }
 0x154   : > { %254 = vrot.lane.b32.xlu1 %v243_v25, %s457_s6  ;;  %v246_v31 = vadd.f32 %v243_v25, %v164_v29  ;;  %416 = vpow2.f32 %v336_v30 }
 0x156   : > { %v339_v32 = vmul.f32 -1.442695, %v246_v31 }
 0x158   : > { %418 = vpow2.f32 %v339_v32 }
 0x15e   : > { %v417_v33 = vpop.eup %416 }
 0x15f   : > { %v141_v34 = vadd.f32 1.0, %v417_v33 }
 0x161   : > { %420 = vrcp.f32 %v141_v34 }
 0x162   : > { %v419_v35 = vpop.eup %418 }
 0x163   : > { %v250_v36 = vadd.f32 1.0, %v419_v35 }
 0x165   : > { %422 = vrcp.f32 %v250_v36 }
 0x16b   : > { %v421_v38 = vpop.eup %420 }
 0x16c   : > { %v155_v55 = vsub.f32 1.0, %v421_v38  ;;  %v161_v57 = vmul.f32 %v446_v11, %v421_v38 }
 0x16f   : > { %v423_v42 = vpop.eup %422 }
 0x170   : > { %v264_v60 = vsub.f32 1.0, %v423_v42  ;;  %v270_v63 = vmul.f32 %v442_v10, %v423_v42 }
 0x1c2   : > { %v146_v39 = vpop.permute.xlu1 %145 }
 0x1c3   : > { %v148_v40 = vmul.f32 %v421_v38, %v146_v39 }
 0x1c5   : > { %150 = vrot.lane.b32.xlu0 %v148_v40, %s457_s6 }
 0x1c6   : > { %v255_v43 = vpop.permute.xlu1 %254 }
 0x1c7   : > { %v257_v45 = vmul.f32 %v423_v42, %v255_v43 }
 0x1c9   : > { %259 = vrot.lane.b32.xlu1 %v257_v45, %s457_s6  ;;  %275 = vperm.xlu0 %414, %v273_v44  }
 0x1cd   : > { %282 = vperm.xlu1 %415, %v280_v46  }
 0x237   : > { %v151_v47 = vpop.permute.xlu0 %150 }
 0x238   : > { %v153_v48 = vadd.f32 %v151_v47, %v54_v27 }
 0x23a   : > { %424 = vtanh.f32 %v153_v48 }
 0x23b   : > { %v260_v49 = vpop.permute.xlu1 %259 }
 0x23c   : > { %v262_v50 = vadd.f32 %v260_v49, %v164_v29 }
 0x23e   : > { %426 = vtanh.f32 %v262_v50 }
 0x244   : > { %v425_v51 = vpop.eup %424 }
 0x245   : > { %157 = vrot.lane.b32.xlu1 %v425_v51, %s453_s5 }
 0x248   : > { %v427_v52 = vpop.eup %426  ;;  %v276_v54 = vpop.permute.xlu0 %275 }
 0x249   : > { %266 = vrot.lane.b32.xlu0 %v427_v52, %s453_s5  ;;  %vm277_vm4 = vcmp.eq.s32.totalorder %v276_v54, 1 }
 0x24c   : > { %v283_v53 = vpop.permute.xlu1 %282 }
 0x24d   : > { %vm284_vm5 = vcmp.eq.s32.totalorder %v283_v53, 1 }
 0x2b7   : > { %v158_v56 = vpop.permute.xlu1 %157 }
 0x2b8   : > { %v160_v58 = vmul.f32 %v158_v56, %v155_v55 }
 0x2ba   : > { %v162_v59 = vadd.f32 %v161_v57, %v160_v58 }
 0x2bb   : > { %v267_v61 = vpop.permute.xlu0 %266 }
 0x2bc   : > { %v278_v11 = vsel %vm277_vm4, %v446_v11, %v162_v59   ;;  %v286_v62 = vsel %vm277_vm4, 0.0, %v162_v59  ;;  %v269_v12 = vmul.f32 %v267_v61, %v264_v60 }
 0x2bd   : > { %288 = vrot.lane.b32.xlu1 %v286_v62, %s453_s5 }
 0x2be   : > { %v271_v13 = vadd.f32 %v270_v63, %v269_v12 }
 0x2c0   : > { %v285_v10 = vsel %vm284_vm5, %v442_v10, %v271_v13   ;;  %v294_v14 = vsel %vm284_vm5, 0.0, %v271_v13 }
 0x2c1   : > { %296 = vrot.lane.b32.xlu0 %v294_v14, %s453_s5 }
 0x32e   :  { %42 = sbr.rel (!%p40_p0) target bundleno = 5 (0x5), region = 69 }
 0x32f   : > { %v289_v15 = vpop.permute.xlu1 %288 }
 0x330   : > { %293 = vst.msk [vmem:[%s291_s19] sm:$0x3] %vm292_vm6, %v289_v15 }
 0x333   : > { %v297_v16 = vpop.permute.xlu0 %296 }
 0x334   : > { %300 = vst.msk [vmem:[%s299_s21] sm:$0x3] %vm292_vm6, %v297_v16 }

// kernel: dl4mt_forward.11
= control target key start
LH: loop header
LB: loop body
LE: loop exit
PB: predicated region body
PF: predicated region fallthrough
CT: control target
= control target key end

     0   :  { %vm27_vm0 = vcmask 261120   ;;  %vm109_vm1 = vcmask 785408   ;;  %s191_s1 = inlined_call_operand.vmem [shape: f32[32,96], index: 1, kind: input, shape index: {}]   ;;  %s192_s0 = inlined_call_operand.vmem [shape: f32[16,32], index: 0, kind: input, shape index: {}]   ;;  %s193_s2 = inlined_call_operand.vmem [shape: f32[1,96], index: 2, kind: input, shape index: {}]   ;;  %s194_s3 = inlined_call_operand.vmem [shape: f32[16,96], index: 3, kind: output, shape index: {}]  }
   0x1   :  { %v16_v0 = vld [vmem:[%s191_s1] sm:$0xff]  ;;  %v17_v1 = vld [vmem:[%s191_s1 + $0x8] sm:$0xff]  ;;  %v18_v2 = vld [vmem:[%s191_s1 + $0x10] sm:$0xff] }
   0x2   :  { %v136_v3 = vpack.c.bf16 %v17_v1, %v16_v0  ;;  %v19_v4 = vld [vmem:[%s191_s1 + $0x18] sm:$0xff]  ;;  %v14_v5 = vld [vmem:[%s192_s0] sm:$0xff]  ;;  %v15_v7 = vld [vmem:[%s192_s0 + $0x8] sm:$0xff] }
   0x3   :  { %v140_v6 = vpack.c.bf16 %v19_v4, %v18_v2  ;;  %133 = vmatprep.mubr.msk.f32.mxu0 %vm27_vm0, %v14_v5  ;;  %v116_v8 = vld [vmem:[%s193_s2] ss:$0 sm:$0xff] }
   0x4   :  { %137 = vmatprep.subr.bf16.mxu0 %v136_v3 }
   0x5   :  { %139 = vmatpush3.bf16.msra.mxu0 %v136_v3 }
   0x6   :  { %141 = vmatprep.subr.bf16.mxu0 %v140_v6 }
   0x9   :  { %143 = vmatpush3.bf16.msra.mxu0 %v140_v6 }
   0xc   :  { %134 = vmatmul.mubr.msk.f32.vlgmr.msra.gmra.mrb[0].mxu0 %vm27_vm0, %v15_v7 }
  0xdf   :  { %v135_v9 = vpop.f32.mrb[0].mxu0 }
  0xe0   :  { %v106_v10 = vadd.f32 %v135_v9, %v116_v8  ;;  %v100_v11 = vpop.f32.mrb[1].mxu0 }
  0xe1   :  { %v101_v12 = vadd.f32 %v116_v8, %v100_v11 }
  0xe2   :  { %111 = vst.msk [vmem:[%s194_s3 + $0x8] sm:$0xff] %vm109_vm1, %v106_v10 }
  0xe3   :  { %110 = vst.msk [vmem:[%s194_s3] sm:$0xff] %vm109_vm1, %v101_v12 }

// kernel: dl4mt_forward.13
= control target key start
LH: loop header
LB: loop body
LE: loop exit
PB: predicated region body
PF: predicated region fallthrough
CT: control target
= control target key end

     0   :  { %vm116_vm0 = vcmask 261120   ;;  %s296_s1 = inlined_call_operand.vmem [shape: f32[128,32], index: 1, kind: input, shape index: {}]   ;;  %s297_s0 = inlined_call_operand.vmem [shape: f32[16,128], index: 0, kind: input, shape index: {}]   ;;  %s298_s2 = inlined_call_operand.vmem [shape: f32[1,32], index: 2, kind: input, shape index: {}]   ;;  %s299_s3 = inlined_call_operand.vmem [shape: f32[16,32], index: 3, kind: output, shape index: {}]  }
   0x1   :  { %v16_v0 = vld [vmem:[%s296_s1] sm:$0xff]  ;;  %v17_v1 = vld [vmem:[%s296_s1 + $0x8] sm:$0xff]  ;;  %v18_v2 = vld [vmem:[%s296_s1 + $0x10] sm:$0xff] }
   0x2   :  { %v177_v3 = vpack.c.bf16 %v17_v1, %v16_v0  ;;  %v19_v4 = vld [vmem:[%s296_s1 + $0x18] sm:$0xff]  ;;  %v20_v6 = vld [vmem:[%s296_s1 + $0x20] sm:$0xff]  ;;  %v21_v7 = vld [vmem:[%s296_s1 + $0x28] sm:$0xff] }
   0x3   :  { %v181_v5 = vpack.c.bf16 %v19_v4, %v18_v2  ;;  %v185_v8 = vpack.c.bf16 %v21_v7, %v20_v6  ;;  %v14_v9 = vld [vmem:[%s297_s0] sm:$0xff]  ;;  %v22_v10 = vld [vmem:[%s296_s1 + $0x30] sm:$0xff]  ;;  %v23_v11 = vld [vmem:[%s296_s1 + $0x38] sm:$0xff] }
   0x4   :  { %178 = vmatprep.subr.bf16.mxu0 %v177_v3  ;;  %174 = vmatprep.mubr.f32.mxu0 %v14_v9  ;;  %v189_v12 = vpack.c.bf16 %v23_v11, %v22_v10  ;;  %v24_v13 = vld [vmem:[%s296_s1 + $0x40] sm:$0xff]  ;;  %v25_v14 = vld [vmem:[%s296_s1 + $0x48] sm:$0xff]  ;;  %v26_v16 = vld [vmem:[%s296_s1 + $0x50] sm:$0xff] }
   0x5   :  { %180 = vmatpush3.bf16.msra.mxu0 %v177_v3  ;;  %v193_v15 = vpack.c.bf16 %v25_v14, %v24_v13  ;;  %v27_v17 = vld [vmem:[%s296_s1 + $0x58] sm:$0xff]  ;;  %v28_v19 = vld [vmem:[%s296_s1 + $0x60] sm:$0xff]  ;;  %v29_v20 = vld [vmem:[%s296_s1 + $0x68] sm:$0xff] }
   0x6   :  { %182 = vmatprep.subr.bf16.mxu0 %v181_v5  ;;  %v197_v18 = vpack.c.bf16 %v27_v17, %v26_v16  ;;  %v201_v21 = vpack.c.bf16 %v29_v20, %v28_v19  ;;  %v30_v22 = vld [vmem:[%s296_s1 + $0x70] sm:$0xff]  ;;  %v31_v23 = vld [vmem:[%s296_s1 + $0x78] sm:$0xff]  ;;  %v15_v25 = vld [vmem:[%s297_s0 + $0x8] sm:$0xff] }
   0x7   :  { %v205_v24 = vpack.c.bf16 %v31_v23, %v30_v22  ;;  %v123_v26 = vld [vmem:[%s298_s2] ss:$0 sm:$0xff] }
   0x9   :  { %184 = vmatpush3.bf16.msra.mxu0 %v181_v5 }
   0xa   :  { %186 = vmatprep.subr.bf16.mxu0 %v185_v8 }
   0xd   :  { %188 = vmatpush3.bf16.msra.mxu0 %v185_v8 }
   0xe   :  { %190 = vmatprep.subr.bf16.mxu0 %v189_v12 }
  0x11   :  { %192 = vmatpush3.bf16.msra.mxu0 %v189_v12 }
  0x12   :  { %194 = vmatprep.subr.bf16.mxu0 %v193_v15 }
  0x15   :  { %196 = vmatpush3.bf16.msra.mxu0 %v193_v15 }
  0x16   :  { %198 = vmatprep.subr.bf16.mxu0 %v197_v18 }
  0x19   :  { %200 = vmatpush3.bf16.msra.mxu0 %v197_v18 }
  0x1a   :  { %202 = vmatprep.subr.bf16.mxu0 %v201_v21 }
  0x1d   :  { %204 = vmatpush3.bf16.msra.mxu0 %v201_v21 }
  0x1e   :  { %206 = vmatprep.subr.bf16.mxu0 %v205_v24 }
  0x21   :  { %208 = vmatpush3.bf16.msra.mxu0 %v205_v24 }
  0x24   :  { %175 = vmatmul.mubr.f32.vlgmr.msra.gmra.mrb[0].mxu0 %v15_v25 }
  0xf7   :  { %v176_v27 = vpop.f32.mrb[0].mxu0 }
  0xf8   :  { %v111_v28 = vadd.f32 %v176_v27, %v123_v26  ;;  %v105_v29 = vpop.f32.mrb[1].mxu0 }
  0xf9   :  { %v106_v30 = vadd.f32 %v123_v26, %v105_v29 }
  0xfa   :  { %209 = vtanh.f32 %v111_v28 }
  0xfb   :  { %211 = vtanh.f32 %v106_v30 }
 0x104   :  { %v210_v31 = vpop.eup %209 }
 0x105   :  { %v212_v32 = vpop.eup %211  ;;  %118 = vst.msk [vmem:[%s299_s3 + $0x8] sm:$0xff] %vm116_vm0, %v210_v31 }
 0x106   :  { %117 = vst.msk [vmem:[%s299_s3] sm:$0xff] %vm116_vm0, %v212_v32 }

// kernel: dl4mt_forward.12
= control target key start
LH: loop header
LB: loop body
LE: loop exit
PB: predicated region body
PF: predicated region fallthrough
CT: control target
= control target key end

     0   :  { %s1436_s0 = inlined_call_operand.vmem [shape: f32[8,2,96], index: 0, kind: input, shape index: {}]   ;;  %s1437_s1 = inlined_call_operand.vmem [shape: f32[2,8,64], index: 1, kind: input, shape index: {}]   ;;  %s1438_s2 = inlined_call_operand.vmem [shape: f32[2,8,32], index: 2, kind: input, shape index: {}]   ;;  %s1439_s3 = inlined_call_operand.vmem [shape: f32[2,1,8], index: 3, kind: input, shape index: {}]   ;;  %s1440_s5 = inlined_call_operand.vmem [shape: f32[32,96], index: 5, kind: input, shape index: {}]   ;;  %s1441_s14 = inlined_call_operand.vmem [shape: f32[8,2,32], index: 14, kind: output, shape index: {0}]   ;;  %s1442_s15 = inlined_call_operand.vmem [shape: f32[8,2,64], index: 15, kind: output, shape index: {1}]   ;;  %s1443_s6 = inlined_call_operand.vmem [shape: f32[1,96], index: 6, kind: input, shape index: {}]   ;;  %s1444_s7 = inlined_call_operand.vmem [shape: f32[32,32], index: 7, kind: input, shape index: {}]   ;;  %s1445_s8 = inlined_call_operand.vmem [shape: f32[1,32], index: 8, kind: input, shape index: {}]   ;;  %s1446_s9 = inlined_call_operand.vmem [shape: f32[1,32], index: 9, kind: input, shape index: {}]   ;;  %s1447_s10 = inlined_call_operand.vmem [shape: f32[64,96], index: 10, kind: input, shape index: {}]   ;;  %s1448_s11 = inlined_call_operand.vmem [shape: f32[32,96], index: 11, kind: input, shape index: {}]   ;;  %s1449_s12 = inlined_call_operand.vmem [shape: f32[1,96], index: 12, kind: input, shape index: {}]   ;;  %s1450_s4 = inlined_call_operand.vmem [shape: f32[2,32], index: 4, kind: input, shape index: {}]   ;;  %s1451_s13 = inlined_call_operand.vmem [shape: f32[1,96], index: 13, kind: input, shape index: {}]  }
   0x1   :  { %v1164_v0 = vld [vmem:[%s1437_s1] sm:$0xff]  ;;  %v1169_v1 = vld [vmem:[%s1437_s1 + $0x8] sm:$0xff]  ;;  %v1204_v8 = vld [vmem:[%s1440_s5 + $0x10] sm:$0xff] }
   0x2   :  { %v1174_v2 = vld [vmem:[%s1438_s2] sm:$0xff]  ;;  %v1179_v3 = vld [vmem:[%s1438_s2 + $0x8] sm:$0xff]  ;;  %v1209_v9 = vld [vmem:[%s1440_s5 + $0x18] sm:$0xff] }
   0x3   :  { %v1184_v4 = vld [vmem:[%s1439_s3] sm:$0x1]  ;;  %v1189_v5 = vld [vmem:[%s1439_s3 + $0x1] sm:$0x1]  ;;  %v1199_v7 = vld [vmem:[%s1440_s5 + $0x8] sm:$0xff] }
   0x4   :  { %v1194_v6 = vld [vmem:[%s1440_s5] sm:$0xff]  ;;  %v1224_v12 = vld [vmem:[%s1444_s7 + $0x8] sm:$0xff]  ;;  %v1229_v13 = vld [vmem:[%s1444_s7 + $0x10] sm:$0xff] }
   0x5   :  { %v1214_v10 = vld [vmem:[%s1443_s6] ss:$0 sm:$0xff]  ;;  %v1234_v14 = vld [vmem:[%s1444_s7 + $0x18] sm:$0xff]  ;;  %v1254_v18 = vld [vmem:[%s1447_s10 + $0x8] sm:$0xff] }
   0x6   :  { %v1219_v11 = vld [vmem:[%s1444_s7] sm:$0xff]  ;;  %v1259_v19 = vld [vmem:[%s1447_s10 + $0x10] sm:$0xff]  ;;  %v1264_v20 = vld [vmem:[%s1447_s10 + $0x18] sm:$0xff] }
   0x7   :  { %v1239_v15 = vld [vmem:[%s1445_s8] ss:$0 sm:$0xff]  ;;  %v1274_v22 = vld [vmem:[%s1447_s10 + $0x28] sm:$0xff]  ;;  %v1279_v23 = vld [vmem:[%s1447_s10 + $0x30] sm:$0xff]  ;;  %s1321_s8 = smov 0  }
   0x8   :  { %v1244_v16 = vld [vmem:[%s1446_s9] sm:$0x1]  ;;  %v1284_v24 = vld [vmem:[%s1447_s10 + $0x38] sm:$0xff]  ;;  %v1294_v26 = vld [vmem:[%s1448_s11 + $0x8] sm:$0xff] }
   0x9   :  { %v1249_v17 = vld [vmem:[%s1447_s10] sm:$0xff]  ;;  %v1299_v27 = vld [vmem:[%s1448_s11 + $0x10] sm:$0xff]  ;;  %v1304_v28 = vld [vmem:[%s1448_s11 + $0x18] sm:$0xff] }
   0xa   :  { %v1269_v21 = vld [vmem:[%s1447_s10 + $0x20] sm:$0xff] }
   0xb   :  { %v1289_v25 = vld [vmem:[%s1448_s11] sm:$0xff] }
   0xc   :  { %v1309_v29 = vld [vmem:[%s1449_s12] ss:$0 sm:$0xff] }
   0xd   :  { %v1314_v30 = vld [vmem:[%s1451_s13] ss:$0 sm:$0xff] }
   0xe   :  { %v80_v31 = vld [vmem:[%s1450_s4] sm:$0x3]  }
   0xf LB: > { %v982_v32 = vpack.c.bf16 %v1199_v7, %v1194_v6  ;;  %v1074_v33 = vmov 0.0|0.0   ;;  %v985_v34 = vpack.c.bf16 %v1209_v9, %v1204_v8  ;;  %vm1075_vm0 = vmmov 0   ;;  %s1077_s4 = smov 64   ;;  %s1347_s11 = sshll.u32 %s1072_s8, 1  ;;  %s1072_s8 = sphi %s1321_s8, %s86_s8   ;;  %v1068_v31 = vphi %v80_v31, %v829_v31  }
  0x10   : > { %981 = vmatprep.subr.bf16.mxu0 %v1074_v33  ;;  %987 = vmatprep.subr.bf16.mxu1 %v1074_v33  ;;  %v1076_v35 = vmov 0.0   ;;  %vm97_vm1 = vcmask 261120   ;;  %s89_s20 = scalar_lea.vmem %s1436_s0, %s1347_s11  ;;  %v988_v49 = vpack.c.bf16 %v1224_v12, %v1219_v11  ;;  %v991_v50 = vpack.c.bf16 %v1234_v14, %v1229_v13  ;;  %s1078_s9 = smov 96  }
  0x11   : > { %983 = vmatpush3.bf16.msra.mxu0 %v982_v32  ;;  %917 = vmatprep.mubr.msk.f32.mxu0 %vm1075_vm0, %v1076_v35  ;;  %v90_v39 = vld [vmem:[%s89_s20] sm:$0x3]  ;;  %s1079_s3 = smov 32   ;;  %v1080_v59 = vmov 1966171168   ;;  %v285_v61 = vlaneseq  ;;  %vm467_vm2 = vcmp.gt.f32.partialorder %v1184_v4, 0.5  ;;  %s835_s23 = scalar_lea.vmem %s1442_s15, %s1347_s11 }
  0x12   : > { %984 = vmatprep.subr.bf16.mxu0 %v1074_v33  ;;  %928 = vmatprep.mubr.msk.f32.mxu1 %vm1075_vm0, %v1076_v35  ;;  %v283_v60 = vunpack.c.l.s4 %v1080_v59  ;;  %vm471_vm3 = vcmask 57344   ;;  %vm468_vm4 = vcmp.gt.f32.partialorder %v1189_v5, 0.5  ;;  %vm494_vm5 = vcmask 64512   ;;  %s831_s26 = scalar_lea.vmem %s1441_s14, %s1347_s11  ;;  %s86_s8 = sadd.s32 1, %s1072_s8  }
  0x13   : > { %989 = vmatpush3.bf16.msra.mxu1 %v988_v49  ;;  %v286_v63 = vshrl.u32 %v285_v61, 7  ;;  %vm650_vm6 = vcmask 1041409   ;;  %vm836_vm7 = vcmask 517120   ;;  %vm652_vm8 = vcmask 523264   ;;  %p83_p0 = scmp.ge.s32.totalorder %s86_s8, 8  }
  0x14   : > { %990 = vmatprep.subr.bf16.mxu1 %v1074_v33  ;;  %v284_v62 = vunpack.c.0.s8 %v283_v60  ;;  %vm832_vm9 = vcmask 254976  }
  0x15   : > { %986 = vmatpush3.bf16.msra.mxu0 %v985_v34 }
  0x16   : > { %941 = vmatprep.subr.mxu0 %v1076_v35 }
  0x17   : > { %992 = vmatpush3.bf16.msra.mxu1 %v991_v50 }
  0x18   : > { %918 = vmatmul.mubr.msk.f32.vlgmr.msra.gmra.mrb[0].mxu0 %vm97_vm1, %v1068_v31  ;;  %931 = vmatprep.subr.mxu1 %v1076_v35 }
  0x19   : > { %942 = vmatpush3.msra.mxu0 %v1164_v0  ;;  %943 = vmatprep.mubr.msk.f32.mxu0 %vm1075_vm0, %v1076_v35 }
  0x1a   : > { %993 = vmatprep.subr.bf16.mxu0 %v1074_v33 }
  0xeb   : > { %v167_v36 = vpop.f32.mrb[0].mxu0 }
  0xec   : > { %v168_v37 = vadd.f32 %v1214_v10, %v167_v36  ;;  %v919_v38 = vpop.f32.mrb[1].mxu0 }
  0xed   : > { %v306_v38 = vsub.s32 0, %v286_v63 }
  0xee   : > { %179 = vrot.lane.b32.xlu0 %v168_v37, %s1077_s4  ;;  %v171_v40 = vadd.f32 %v168_v37, %v90_v39 }
  0xf0   : > { %v863_v41 = vmul.f32 -1.442695, %v171_v40 }
  0xf2   : > { %1034 = vpow2.f32 %v863_v41 }
  0xfc   : > { %v1035_v42 = vpop.eup %1034 }
  0xfd   : > { %v175_v43 = vadd.f32 1.0, %v1035_v42 }
  0xff   : > { %1036 = vrcp.f32 %v175_v43 }
 0x109   : > { %v1037_v44 = vpop.eup %1036 }
 0x10a   : > { %v189_v53 = vsub.f32 1.0, %v1037_v44 }
 0x160   : > { %v180_v45 = vpop.permute.xlu0 %179 }
 0x161   : > { %v182_v46 = vmul.f32 %v1037_v44, %v180_v45 }
 0x163   : > { %184 = vrot.lane.b32.xlu0 %v182_v46, %s1077_s4 }
 0x1d5   : > { %v185_v47 = vpop.permute.xlu0 %184 }
 0x1d6   : > { %v187_v48 = vadd.f32 %v185_v47, %v90_v39 }
 0x1d8   : > { %1038 = vtanh.f32 %v187_v48 }
 0x1e2   : > { %v1039_v51 = vpop.eup %1038 }
 0x1e3   : > { %191 = vrot.lane.b32.xlu1 %v1039_v51, %s1078_s9 }
 0x1e7   : > { %195 = vrot.lane.b32.xlu1 %v1068_v31, %s1079_s3  ;;  %v287_v31 = vsub.s32 %v284_v62, %v286_v63 }
 0x255   : > { %v192_v52 = vpop.permute.xlu1 %191 }
 0x256   : > { %v194_v55 = vmul.f32 %v192_v52, %v189_v53 }
 0x259   : > { %v196_v54 = vpop.permute.xlu1 %195 }
 0x25a   : > { %v198_v56 = vmul.f32 %v1037_v44, %v196_v54 }
 0x25c   : > { %v1361_v57 = vadd.f32 %v198_v56, %v194_v55 }
 0x25e   : > { %207 = vrot.lane.b32.xlu0 %v1361_v57, %s1078_s9 }
 0x2d0   : > { %v1365_v58 = vpop.permute.xlu0 %207 }
 0x2d1   : > { %929 = vmatmul.mubr.msk.f32.vlgmr.msra.gmra.mrb[0].mxu1 %vm97_vm1, %v1365_v58 }
 0x2d2   : > { %933 = vmatprep.mubr.msk.f32.mxu1 %vm1075_vm0, %v1076_v35 }
 0x3a4   : > { %v277_v32 = vpop.f32.mrb[0].mxu1 }
 0x3a5   : > { %v278_v34 = vadd.f32 %v1239_v15, %v277_v32  ;;  %v930_v36 = vpop.f32.mrb[1].mxu1 }
 0x3a7   : > { %v288_v37 = vrot.slane %v278_v34, %v287_v31 }
 0x3a9   : > { %v289_v39 = vcombine.high %v288_v37, %v288_v37  ;;  %v296_v40 = vrot.slane %v288_v37, %v287_v31 }
 0x3ab   : > { %v303_v41 = vrot.slane %v289_v39, %v287_v31  ;;  %v307_v42 = vrot.slane %v296_v40, %v306_v38  ;;  %v994_v40 = vpack.c.bf16 %v1254_v18, %v1249_v17 }
 0x3ad   : > { %v311_v43 = vrot.slane %v303_v41, %v306_v38  ;;  %v314_v44 = vadd.f32 %v307_v42, %v1174_v2 }
 0x3af   : > { %v315_v45 = vadd.f32 %v311_v43, %v1179_v3  ;;  %1040 = vtanh.f32 %v314_v44  ;;  %v1006_v43 = vpack.c.bf16 %v1294_v26, %v1289_v25 }
 0x3b1   : > { %1042 = vtanh.f32 %v315_v45  ;;  %v997_v45 = vpack.c.bf16 %v1264_v20, %v1259_v19 }
 0x3b9   : > { %v1041_v46 = vpop.eup %1040 }
 0x3ba   : > { %932 = vmatpush3.xpose.msk.msra.mxu1 %vm97_vm1, %v1041_v46  ;;  %v1009_v46 = vpack.c.bf16 %v1304_v28, %v1299_v27 }
 0x3bb   : > { %936 = vmatprep.subr.mxu1 %v1076_v35  ;;  %v1043_v47 = vpop.eup %1042 }
 0x3bd   : > { %934 = vmatmul.mubr.msk.f32.vlgmr.msra.gmra.mrb[2].mxu1 %vm97_vm1, %v1244_v16 }
 0x3be   : > { %937 = vmatpush3.xpose.msk.msra.mxu1 %vm97_vm1, %v1043_v47  ;;  %938 = vmatprep.mubr.msk.f32.mxu1 %vm1075_vm0, %v1076_v35  ;;  %v1000_v47 = vpack.c.bf16 %v1274_v22, %v1269_v21 }
 0x3bf   : > { %946 = vmatprep.subr.mxu1 %v1076_v35 }
 0x3c1   : > { %939 = vmatmul.mubr.msk.f32.vlgmr.msra.gmra.mrb[4].mxu1 %vm97_vm1, %v1244_v16 }
 0x3c2   : > { %947 = vmatpush3.msra.mxu1 %v1169_v1  ;;  %948 = vmatprep.mubr.msk.f32.mxu1 %vm1075_vm0, %v1076_v35 }
 0x3c3   : > { %1005 = vmatprep.subr.bf16.mxu1 %v1074_v33 }
 0x490   : > { %v390_v48 = vpop.f32.mrb[2].mxu1 }
 0x491   : > { %v469_v49 = vsel %vm467_vm2, -1e+18, %v390_v48  ;;  %v935_v50 = vpop.f32.mrb[3].mxu1  ;;  %v1003_v48 = vpack.c.bf16 %v1284_v24, %v1279_v23 }
 0x492   : > { %v472_v51 = vsel %vm471_vm3, %v469_v49, -inf }
 0x493   : > { %473 = vmax.xlane.f32.xlu0 %v472_v51 }
 0x494   : > { %v463_v52 = vpop.f32.mrb[4].mxu1 }
 0x495   : > { %v470_v53 = vsel %vm468_vm4, -1e+18, %v463_v52  ;;  %v940_v54 = vpop.f32.mrb[5].mxu1 }
 0x496   : > { %v475_v55 = vsel %vm471_vm3, %v470_v53, -inf }
 0x497   : > { %476 = vmax.xlane.f32.xlu1 %v475_v55 }
 0x520   : > { %v474_v56 = vpop.xlane.xlu0 %473 }
 0x521   : > { %v478_v59 = vsub.f32 %v469_v49, %v474_v56 }
 0x523   : > { %v480_v60 = vmul.f32 1.442695, %v478_v59 }
 0x524   : > { %v477_v61 = vpop.xlane.xlu1 %476 }
 0x525   : > { %1044 = vpow2.f32 %v480_v60  ;;  %v479_v62 = vsub.f32 %v470_v53, %v477_v61 }
 0x527   : > { %v482_v63 = vmul.f32 1.442695, %v479_v62 }
 0x529   : > { %1046 = vpow2.f32 %v482_v63 }
 0x52f   : > { %v1045_v31 = vpop.eup %1044 }
 0x530   : > { %v484_v32 = vsel %vm471_vm3, %v1045_v31, 0.0 }
 0x531   : > { %485 = vadd.xlane.f32.xlu1 %v484_v32 }
 0x533   : > { %v1047_v34 = vpop.eup %1046 }
 0x534   : > { %v487_v36 = vsel %vm471_vm3, %v1047_v34, 0.0 }
 0x535   : > { %488 = vadd.xlane.f32.xlu0 %v487_v36 }
 0x5be   : > { %v486_v37 = vpop.xlane.xlu1 %485 }
 0x5bf   : > { %1048 = vrcp.f32 %v486_v37 }
 0x5c2   : > { %v489_v38 = vpop.xlane.xlu0 %488 }
 0x5c3   : > { %1050 = vrcp.f32 %v489_v38 }
 0x5c9   : > { %v1049_v39 = vpop.eup %1048 }
 0x5ca   : > { %v491_v41 = vmul.f32 %v1049_v39, %v1045_v31 }
 0x5cc   : > { %944 = vmatmul.mubr.msk.f32.vlgmr.msra.gmra.mrb[2].mxu0 %vm494_vm5, %v491_v41 }
 0x5cd   : > { %v1051_v42 = vpop.eup %1050  ;;  %995 = vmatpush3.bf16.msra.mxu0 %v994_v40  ;;  %967 = vmatprep.mubr.msk.f32.mxu0 %vm1075_vm0, %v1076_v35 }
 0x5ce   : > { %v493_v44 = vmul.f32 %v1051_v42, %v1047_v34  ;;  %996 = vmatprep.subr.bf16.mxu0 %v1074_v33 }
 0x5d0   : > { %949 = vmatmul.mubr.msk.f32.vlgmr.msra.gmra.mrb[6].mxu1 %vm494_vm5, %v493_v44 }
 0x5d1   : > { %1007 = vmatpush3.bf16.msra.mxu1 %v1006_v43  ;;  %978 = vmatprep.mubr.msk.f32.mxu1 %vm1075_vm0, %v1076_v35 }
 0x5d2   : > { %1008 = vmatprep.subr.bf16.mxu1 %v1074_v33  ;;  %998 = vmatpush3.bf16.msra.mxu0 %v997_v45 }
 0x5d3   : > { %999 = vmatprep.subr.bf16.mxu0 %v1074_v33 }
 0x5d5   : > { %1010 = vmatpush3.bf16.msra.mxu1 %v1009_v46 }
 0x5d6   : > { %1001 = vmatpush3.bf16.msra.mxu0 %v1000_v47 }
 0x5d7   : > { %1002 = vmatprep.subr.bf16.mxu0 %v1074_v33 }
 0x5d8   : > { %979 = vmatmul.mubr.msk.f32.vlgmr.msra.gmra.mrb[8].mxu1 %vm97_vm1, %v1365_v58 }
 0x5da   : > { %1004 = vmatpush3.bf16.msra.mxu0 %v1003_v48 }
 0x69f   : > { %v564_v35 = vpop.f32.mrb[2].mxu0 }
 0x6a0   : > { %v945_v49 = vpop.f32.mrb[3].mxu0 }
 0x6a3   : > { %v637_v50 = vpop.f32.mrb[6].mxu1 }
 0x6a4   : > { %v649_v51 = vrot.slane %v637_v50, 7  ;;  %v950_v58 = vpop.f32.mrb[7].mxu1 }
 0x6a6   : > { %v651_v52 = vsel %vm650_vm6, %v649_v51, %v564_v35 }
 0x6a7   : > { %837 = vst.msk [vmem:[%s835_s23] sm:$0x3] %vm836_vm7, %v651_v52  ;;  %968 = vmatmul.mubr.msk.f32.vlgmr.msra.gmra.mrb[4].mxu0 %vm652_vm8, %v651_v52 }
 0x6ab   : > { %v797_v33 = vpop.f32.mrb[8].mxu1 }
 0x6ac   : > { %v798_v53 = vadd.f32 %v1314_v30, %v797_v33  ;;  %v980_v54 = vpop.f32.mrb[9].mxu1 }
 0x6ae   : > { %809 = vrot.lane.b32.xlu0 %v798_v53, %s1077_s4 }
 0x720   : > { %v810_v32 = vpop.permute.xlu0 %809 }
 0x77a   : > { %v721_v55 = vpop.f32.mrb[4].mxu0 }
 0x77b   : > { %v722_v56 = vadd.f32 %v1309_v29, %v721_v55  ;;  %v969_v59 = vpop.f32.mrb[5].mxu0 }
 0x77d   : > { %v801_v60 = vadd.f32 %v798_v53, %v722_v56 }
 0x77f   : > { %v876_v61 = vmul.f32 -1.442695, %v801_v60 }
 0x781   : > { %1052 = vpow2.f32 %v876_v61 }
 0x78b   : > { %v1053_v62 = vpop.eup %1052 }
 0x78c   : > { %v805_v63 = vadd.f32 1.0, %v1053_v62 }
 0x78e   : > { %1054 = vrcp.f32 %v805_v63 }
 0x798   : > { %v1055_v31 = vpop.eup %1054 }
 0x799   : > { %v812_v34 = vmul.f32 %v1055_v31, %v810_v32  ;;  %v819_v39 = vsub.f32 1.0, %v1055_v31  ;;  %v825_v41 = vmul.f32 %v1055_v31, %v1361_v57 }
 0x79b   : > { %814 = vrot.lane.b32.xlu1 %v812_v34, %s1077_s4 }
 0x80d   : > { %v815_v36 = vpop.permute.xlu1 %814 }
 0x80e   : > { %v817_v37 = vadd.f32 %v815_v36, %v722_v56 }
 0x810   : > { %1056 = vtanh.f32 %v817_v37 }
 0x81a   : > { %v1057_v38 = vpop.eup %1056 }
 0x81b   : > { %821 = vrot.lane.b32.xlu1 %v1057_v38, %s1078_s9 }
 0x88d   : > { %v822_v40 = vpop.permute.xlu1 %821 }
 0x88e   : > { %v824_v42 = vmul.f32 %v822_v40, %v819_v39 }
 0x890   : > { %v826_v43 = vadd.f32 %v825_v41, %v824_v42 }
 0x892   : > { %828 = vrot.lane.b32.xlu0 %v826_v43, %s1078_s9 }
 0x8ff   :  { %85 = sbr.rel (!%p83_p0) target bundleno = 15 (0xf), region = 94 }
 0x904   : > { %v829_v31 = vpop.permute.xlu0 %828  }
 0x905   : > { %833 = vst.msk [vmem:[%s831_s26] sm:$0x3] %vm832_vm9, %v829_v31 }

</bundles_post_ra>
